<compile_context>
chip_gen: v7x
topology: tpu7x:2x2x1
jax: 0.10.0
libtpu: 0.0.40
codegen_flags: <defaults>
</compile_context>

<pallas_src>
import functools

import jax
import jax.numpy as jnp
from jax.experimental import pallas as pl
from jax.experimental.pallas import tpu as pltpu

HIDDEN = 256
LANE = 128


def _round_up(n, m):
    return ((n + m - 1) // m) * m


def _sae_kernel(x_ref,
                w1_ref, b1_ref,   # encoder layer 1: Din_p -> 256   (bf16 W, f32 b)
                w2_ref, b2_ref,   # encoder layer 2: 256 -> Dout_p
                w3_ref, b3_ref,   # decoder layer 1: Dout_p -> 256
                w4_ref, b4_ref,   # decoder layer 2: 256 -> Din_p
                enc_ref, dec_ref):
    # matmuls: bf16 inputs, f32 accumulation on the MXU; epilogue stays f32.
    x = x_ref[...].astype(jnp.bfloat16)

    h1 = jnp.dot(x, w1_ref[...], preferred_element_type=jnp.float32) + b1_ref[...]
    h1 = jnp.maximum(h1, 0.0)

    enc = jnp.dot(h1.astype(jnp.bfloat16), w2_ref[...],
                  preferred_element_type=jnp.float32) + b2_ref[...]

    h2 = jnp.dot(enc.astype(jnp.bfloat16), w3_ref[...],
                 preferred_element_type=jnp.float32) + b3_ref[...]
    h2 = jnp.maximum(h2, 0.0)

    dec = jnp.dot(h2.astype(jnp.bfloat16), w4_ref[...],
                  preferred_element_type=jnp.float32) + b4_ref[...]
    dec = jax.nn.sigmoid(dec)

    enc_ref[...] = enc.astype(enc_ref.dtype)
    dec_ref[...] = dec.astype(dec_ref.dtype)


def prepare_params(params):
    """One-time prep (keep OUT of the per-call path):
    transpose PyTorch (out,in) -> (in,out), zero-pad feature dims to multiples
    of 128 lanes, cast weights to bf16, keep biases f32 2-D."""
    w1, b1 = params["w1"], params["b1"]   # (256, Din), (256,)
    w2, b2 = params["w2"], params["b2"]   # (Dout, 256), (Dout,)
    w3, b3 = params["w3"], params["b3"]   # (256, Dout), (256,)
    w4, b4 = params["w4"], params["b4"]   # (Din, 256), (Din,)

    hidden = w1.shape[0]
    din = w1.shape[1]
    dout = w2.shape[0]
    din_p = _round_up(din, LANE)
    dout_p = _round_up(dout, LANE)

    w1t = jnp.zeros((din_p, hidden), jnp.bfloat16).at[:din, :].set(
        w1.T.astype(jnp.bfloat16))
    w2t = jnp.zeros((hidden, dout_p), jnp.bfloat16).at[:, :dout].set(
        w2.T.astype(jnp.bfloat16))
    w3t = jnp.zeros((dout_p, hidden), jnp.bfloat16).at[:dout, :].set(
        w3.T.astype(jnp.bfloat16))
    w4t = jnp.zeros((hidden, din_p), jnp.bfloat16).at[:, :din].set(
        w4.T.astype(jnp.bfloat16))

    b1r = b1.reshape(1, hidden).astype(jnp.float32)
    b2r = jnp.zeros((1, dout_p), jnp.float32).at[:, :dout].set(b2.astype(jnp.float32))
    b3r = b3.reshape(1, hidden).astype(jnp.float32)
    b4r = jnp.zeros((1, din_p), jnp.float32).at[:, :din].set(b4.astype(jnp.float32))

    return dict(w1=w1t, b1=b1r, w2=w2t, b2=b2r, w3=w3t, b3=b3r, w4=w4t, b4=b4r)


@functools.partial(jax.jit, static_argnames=("input_dim", "output_dim", "batch_tile"))
def stacked_autoencoder_forward(x, prepped, *, input_dim, output_dim, batch_tile=128):
    """Full encoder+decoder forward in one Pallas kernel.

    x:       (B, input_dim) float32
    prepped: output of prepare_params() (pre-transposed / padded / bf16 weights)
    Returns (encoded (B, output_dim), decoded (B, input_dim)), both float32.
    """
    B = x.shape[0]
    hidden = prepped["w1"].shape[1]
    din_p = prepped["w1"].shape[0]
    dout_p = prepped["w2"].shape[1]

    # Pad batch to a tile multiple and features to the padded lane width.
    B_p = _round_up(B, batch_tile)
    x_p = jnp.zeros((B_p, din_p), jnp.float32).at[:B, :input_dim].set(
        x.astype(jnp.float32))

    grid = (B_p // batch_tile,)

    def full(shape):
        return pl.BlockSpec(shape, lambda i: tuple(0 for _ in shape))

    # Advisory cost estimate for XLA scheduling around the custom call.
    flops = 2 * B_p * (din_p * hidden + hidden * dout_p
                       + dout_p * hidden + hidden * din_p)
    transcendentals = B_p * din_p  # sigmoid on the decoder output
    weight_bytes = 2 * (din_p * hidden + hidden * dout_p
                        + dout_p * hidden + hidden * din_p)  # bf16
    bias_bytes = 4 * (2 * hidden + dout_p + din_p)
    io_bytes = 4 * (B_p * din_p + B_p * dout_p + B_p * din_p)
    cost = pl.CostEstimate(flops=flops,
                           transcendentals=transcendentals,
                           bytes_accessed=weight_bytes + bias_bytes + io_bytes)

    # VMEM budget: double-buffered x/enc/dec tiles + double-buffered bf16
    # weights + headroom for f32 intermediates; capped well below v7x's 64 MiB.
    tile_bytes = 2 * 4 * batch_tile * (din_p + dout_p + din_p)
    vmem_est = tile_bytes + 2 * weight_bytes + 4 * 4 * batch_tile * hidden
    vmem_limit = min(max(2 * vmem_est, 32 * 1024 * 1024), 48 * 1024 * 1024)

    enc_p, dec_p = pl.pallas_call(
        _sae_kernel,
        out_shape=(
            jax.ShapeDtypeStruct((B_p, dout_p), jnp.float32),
            jax.ShapeDtypeStruct((B_p, din_p), jnp.float32),
        ),
        grid_spec=pltpu.PrefetchScalarGridSpec(
            num_scalar_prefetch=0,
            grid=grid,
            in_specs=[
                pl.BlockSpec((batch_tile, din_p), lambda i: (i, 0)),   # x tile
                full(prepped["w1"].shape), full(prepped["b1"].shape),
                full(prepped["w2"].shape), full(prepped["b2"].shape),
                full(prepped["w3"].shape), full(prepped["b3"].shape),
                full(prepped["w4"].shape), full(prepped["b4"].shape),
            ],
            out_specs=[
                pl.BlockSpec((batch_tile, dout_p), lambda i: (i, 0)),
                pl.BlockSpec((batch_tile, din_p), lambda i: (i, 0)),
            ],
        ),
        compiler_params=pltpu.CompilerParams(
            dimension_semantics=("parallel",),
            vmem_limit_bytes=int(vmem_limit),
        ),
        cost_estimate=cost,
    )(x_p, prepped["w1"], prepped["b1"], prepped["w2"], prepped["b2"],
      prepped["w3"], prepped["b3"], prepped["w4"], prepped["b4"])

    # Strip batch + lane padding.
    encoded = enc_p[:B, :output_dim]
    decoded = dec_p[:B, :input_dim]
    return encoded, decoded


def init_params(key, input_dim, output_dim, hidden=HIDDEN):
    """Deterministic synthetic parameters with PyTorch nn.Linear shapes."""
    ks = jax.random.split(key, 8)

    def lin(kw, kb, out_d, in_d):
        bound = 1.0 / jnp.sqrt(in_d)
        w = jax.random.uniform(kw, (out_d, in_d), jnp.float32, -bound, bound)
        b = jax.random.uniform(kb, (out_d,), jnp.float32, -bound, bound)
        return w, b

    w1, b1 = lin(ks[0], ks[1], hidden, input_dim)
    w2, b2 = lin(ks[2], ks[3], output_dim, hidden)
    w3, b3 = lin(ks[4], ks[5], hidden, output_dim)
    w4, b4 = lin(ks[6], ks[7], input_dim, hidden)
    return dict(w1=w1, b1=b1, w2=w2, b2=b2, w3=w3, b3=b3, w4=w4, b4=b4)


def _reference_forward(x, p):
    h1 = jnp.maximum(x @ p["w1"].T + p["b1"], 0.0)
    enc = h1 @ p["w2"].T + p["b2"]
    h2 = jnp.maximum(enc @ p["w3"].T + p["b3"], 0.0)
    dec = jax.nn.sigmoid(h2 @ p["w4"].T + p["b4"])
    return enc, dec


if __name__ == "__main__":
    key = jax.random.PRNGKey(0)
    k_x, k_p = jax.random.split(key)

    batch = 256          # pads to 2 grid steps of 128 -> both v7x TCs get work
    input_dim = 128
    output_dim = 32
    batch_tile = 128

    x = jax.random.normal(k_x, (batch, input_dim), jnp.float32)
    params = init_params(k_p, input_dim, output_dim)

    prepped = prepare_params(params)   # one-time prep, outside the jitted call
    prepped = jax.tree_util.tree_map(jax.block_until_ready, prepped)

    enc, dec = stacked_autoencoder_forward(
        x, prepped, input_dim=input_dim, output_dim=output_dim,
        batch_tile=batch_tile)
    jax.block_until_ready((enc, dec))

    enc_ref, dec_ref = _reference_forward(x, params)
    assert enc.shape == (batch, output_dim) and dec.shape == (batch, input_dim)
    # bf16 matmul inputs (f32 accumulation) -> slightly looser tolerance vs f32 ref.
    assert jnp.allclose(enc, enc_ref, atol=3e-2, rtol=3e-2)
    assert jnp.allclose(dec, dec_ref, atol=3e-2, rtol=3e-2)

    print("KERNEL_OK")
</pallas_src>

<mosaic_0001>
module attributes {stable_mosaic.version = 11 : i64} {
  func.func @_sae_kernel(%arg0: i32, %arg1: memref<128x128xf32, #tpu.memory_space<vmem>>, %arg2: memref<128x256xbf16, #tpu.memory_space<vmem>>, %arg3: memref<1x256xf32, #tpu.memory_space<vmem>>, %arg4: memref<256x128xbf16, #tpu.memory_space<vmem>>, %arg5: memref<1x128xf32, #tpu.memory_space<vmem>>, %arg6: memref<128x256xbf16, #tpu.memory_space<vmem>>, %arg7: memref<1x256xf32, #tpu.memory_space<vmem>>, %arg8: memref<256x128xbf16, #tpu.memory_space<vmem>>, %arg9: memref<1x128xf32, #tpu.memory_space<vmem>>, %arg10: memref<128x128xf32, #tpu.memory_space<vmem>>, %arg11: memref<128x128xf32, #tpu.memory_space<vmem>>) attributes {dimension_semantics = [#tpu.dimension_semantics<parallel>], iteration_bounds = array<i64: 2>, scalar_prefetch = 0 : i64, scratch_operands = 0 : i64, tpu.core_type = #tpu.core_type<tc>, window_params = [{transform_indices = @transform_0, window_bounds = array<i64: 128, 128>}, {pipeline_mode = #tpu.pipeline_mode<synchronous>, transform_indices = @transform_1, window_bounds = array<i64: 128, 256>}, {pipeline_mode = #tpu.pipeline_mode<synchronous>, transform_indices = @transform_2, window_bounds = array<i64: 1, 256>}, {pipeline_mode = #tpu.pipeline_mode<synchronous>, transform_indices = @transform_3, window_bounds = array<i64: 256, 128>}, {pipeline_mode = #tpu.pipeline_mode<synchronous>, transform_indices = @transform_4, window_bounds = array<i64: 1, 128>}, {pipeline_mode = #tpu.pipeline_mode<synchronous>, transform_indices = @transform_5, window_bounds = array<i64: 128, 256>}, {pipeline_mode = #tpu.pipeline_mode<synchronous>, transform_indices = @transform_6, window_bounds = array<i64: 1, 256>}, {pipeline_mode = #tpu.pipeline_mode<synchronous>, transform_indices = @transform_7, window_bounds = array<i64: 256, 128>}, {pipeline_mode = #tpu.pipeline_mode<synchronous>, transform_indices = @transform_8, window_bounds = array<i64: 1, 128>}, {transform_indices = @transform_9, window_bounds = array<i64: 128, 128>}, {transform_indices = @transform_10, window_bounds = array<i64: 128, 128>}]} {
    %c0 = arith.constant 0 : index
    %c0_0 = arith.constant 0 : index
    %0 = vector.load %arg1[%c0, %c0_0] : memref<128x128xf32, #tpu.memory_space<vmem>>, vector<128x128xf32>
    %1 = arith.truncf %0 : vector<128x128xf32> to vector<128x128xbf16>
    %c0_1 = arith.constant 0 : index
    %c0_2 = arith.constant 0 : index
    %2 = vector.load %arg2[%c0_1, %c0_2] : memref<128x256xbf16, #tpu.memory_space<vmem>>, vector<128x256xbf16>
    %cst = arith.constant dense<0.000000e+00> : vector<128x256xf32>
    %3 = tpu.matmul %1, %2, %cst {dimension_numbers = #tpu.dot_dimension_numbers<[1], [0], [0], [1], [0, 0, 1, 1], [], []>} : vector<128x128xbf16>, vector<128x256xbf16>, vector<128x256xf32> -> vector<128x256xf32>
    %c0_3 = arith.constant 0 : index
    %c0_4 = arith.constant 0 : index
    %4 = vector.load %arg3[%c0_3, %c0_4] : memref<1x256xf32, #tpu.memory_space<vmem>>, vector<1x256xf32>
    %5 = vector.broadcast %4 : vector<1x256xf32> to vector<128x256xf32>
    %6 = arith.addf %3, %5 : vector<128x256xf32>
    %cst_5 = arith.constant 0.000000e+00 : f32
    %7 = vector.broadcast %cst_5 : f32 to vector<128x256xf32>
    %8 = arith.maximumf %6, %7 : vector<128x256xf32>
    %9 = arith.truncf %8 : vector<128x256xf32> to vector<128x256xbf16>
    %c0_6 = arith.constant 0 : index
    %c0_7 = arith.constant 0 : index
    %10 = vector.load %arg4[%c0_6, %c0_7] : memref<256x128xbf16, #tpu.memory_space<vmem>>, vector<256x128xbf16>
    %cst_8 = arith.constant dense<0.000000e+00> : vector<128x128xf32>
    %11 = tpu.matmul %9, %10, %cst_8 {dimension_numbers = #tpu.dot_dimension_numbers<[1], [0], [0], [1], [0, 0, 1, 1], [], []>} : vector<128x256xbf16>, vector<256x128xbf16>, vector<128x128xf32> -> vector<128x128xf32>
    %c0_9 = arith.constant 0 : index
    %c0_10 = arith.constant 0 : index
    %12 = vector.load %arg5[%c0_9, %c0_10] : memref<1x128xf32, #tpu.memory_space<vmem>>, vector<1x128xf32>
    %13 = vector.broadcast %12 : vector<1x128xf32> to vector<128x128xf32>
    %14 = arith.addf %11, %13 : vector<128x128xf32>
    %15 = arith.truncf %14 : vector<128x128xf32> to vector<128x128xbf16>
    %c0_11 = arith.constant 0 : index
    %c0_12 = arith.constant 0 : index
    %16 = vector.load %arg6[%c0_11, %c0_12] : memref<128x256xbf16, #tpu.memory_space<vmem>>, vector<128x256xbf16>
    %cst_13 = arith.constant dense<0.000000e+00> : vector<128x256xf32>
    %17 = tpu.matmul %15, %16, %cst_13 {dimension_numbers = #tpu.dot_dimension_numbers<[1], [0], [0], [1], [0, 0, 1, 1], [], []>} : vector<128x128xbf16>, vector<128x256xbf16>, vector<128x256xf32> -> vector<128x256xf32>
    %c0_14 = arith.constant 0 : index
    %c0_15 = arith.constant 0 : index
    %18 = vector.load %arg7[%c0_14, %c0_15] : memref<1x256xf32, #tpu.memory_space<vmem>>, vector<1x256xf32>
    %19 = vector.broadcast %18 : vector<1x256xf32> to vector<128x256xf32>
    %20 = arith.addf %17, %19 : vector<128x256xf32>
    %cst_16 = arith.constant 0.000000e+00 : f32
    %21 = vector.broadcast %cst_16 : f32 to vector<128x256xf32>
    %22 = arith.maximumf %20, %21 : vector<128x256xf32>
    %23 = arith.truncf %22 : vector<128x256xf32> to vector<128x256xbf16>
    %c0_17 = arith.constant 0 : index
    %c0_18 = arith.constant 0 : index
    %24 = vector.load %arg8[%c0_17, %c0_18] : memref<256x128xbf16, #tpu.memory_space<vmem>>, vector<256x128xbf16>
    %cst_19 = arith.constant dense<0.000000e+00> : vector<128x128xf32>
    %25 = tpu.matmul %23, %24, %cst_19 {dimension_numbers = #tpu.dot_dimension_numbers<[1], [0], [0], [1], [0, 0, 1, 1], [], []>} : vector<128x256xbf16>, vector<256x128xbf16>, vector<128x128xf32> -> vector<128x128xf32>
    %c0_20 = arith.constant 0 : index
    %c0_21 = arith.constant 0 : index
    %26 = vector.load %arg9[%c0_20, %c0_21] : memref<1x128xf32, #tpu.memory_space<vmem>>, vector<1x128xf32>
    %27 = vector.broadcast %26 : vector<1x128xf32> to vector<128x128xf32>
    %28 = arith.addf %25, %27 : vector<128x128xf32>
    %29 = arith.negf %28 : vector<128x128xf32>
    %30 = math.exp %29 : vector<128x128xf32>
    %cst_22 = arith.constant 1.000000e+00 : f32
    %31 = vector.broadcast %cst_22 : f32 to vector<128x128xf32>
    %32 = arith.addf %31, %30 : vector<128x128xf32>
    %33 = arith.divf %31, %32 : vector<128x128xf32>
    %c0_23 = arith.constant 0 : index
    %c0_24 = arith.constant 0 : index
    %34 = vector.load %arg10[%c0_23, %c0_24] : memref<128x128xf32, #tpu.memory_space<vmem>>, vector<128x128xf32>
    tpu.vector_store %arg10[%c0_23, %c0_24], %14 {strides = array<i32>} : memref<128x128xf32, #tpu.memory_space<vmem>>, vector<128x128xf32>,
    %c0_25 = arith.constant 0 : index
    %c0_26 = arith.constant 0 : index
    %35 = vector.load %arg11[%c0_25, %c0_26] : memref<128x128xf32, #tpu.memory_space<vmem>>, vector<128x128xf32>
    tpu.vector_store %arg11[%c0_25, %c0_26], %33 {strides = array<i32>} : memref<128x128xf32, #tpu.memory_space<vmem>>, vector<128x128xf32>,
    return
  }
  func.func @transform_0(%arg0: i32) -> (i32, i32) {
    %c0_i32 = arith.constant 0 : i32
    %c0_i32_0 = arith.constant 0 : i32
    return %arg0, %c0_i32 : i32, i32
  }
  func.func @transform_1(%arg0: i32) -> (i32, i32) {
    %c0_i32 = arith.constant 0 : i32
    %c0_i32_0 = arith.constant 0 : i32
    %c0_i32_1 = arith.constant 0 : i32
    return %c0_i32, %c0_i32_0 : i32, i32
  }
  func.func @transform_2(%arg0: i32) -> (i32, i32) {
    %c0_i32 = arith.constant 0 : i32
    %c0_i32_0 = arith.constant 0 : i32
    %c0_i32_1 = arith.constant 0 : i32
    return %c0_i32, %c0_i32_0 : i32, i32
  }
  func.func @transform_3(%arg0: i32) -> (i32, i32) {
    %c0_i32 = arith.constant 0 : i32
    %c0_i32_0 = arith.constant 0 : i32
    %c0_i32_1 = arith.constant 0 : i32
    return %c0_i32, %c0_i32_0 : i32, i32
  }
  func.func @transform_4(%arg0: i32) -> (i32, i32) {
    %c0_i32 = arith.constant 0 : i32
    %c0_i32_0 = arith.constant 0 : i32
    %c0_i32_1 = arith.constant 0 : i32
    return %c0_i32, %c0_i32_0 : i32, i32
  }
  func.func @transform_5(%arg0: i32) -> (i32, i32) {
    %c0_i32 = arith.constant 0 : i32
    %c0_i32_0 = arith.constant 0 : i32
    %c0_i32_1 = arith.constant 0 : i32
    return %c0_i32, %c0_i32_0 : i32, i32
  }
  func.func @transform_6(%arg0: i32) -> (i32, i32) {
    %c0_i32 = arith.constant 0 : i32
    %c0_i32_0 = arith.constant 0 : i32
    %c0_i32_1 = arith.constant 0 : i32
    return %c0_i32, %c0_i32_0 : i32, i32
  }
  func.func @transform_7(%arg0: i32) -> (i32, i32) {
    %c0_i32 = arith.constant 0 : i32
    %c0_i32_0 = arith.constant 0 : i32
    %c0_i32_1 = arith.constant 0 : i32
    return %c0_i32, %c0_i32_0 : i32, i32
  }
  func.func @transform_8(%arg0: i32) -> (i32, i32) {
    %c0_i32 = arith.constant 0 : i32
    %c0_i32_0 = arith.constant 0 : i32
    %c0_i32_1 = arith.constant 0 : i32
    return %c0_i32, %c0_i32_0 : i32, i32
  }
  func.func @transform_9(%arg0: i32) -> (i32, i32) {
    %c0_i32 = arith.constant 0 : i32
    %c0_i32_0 = arith.constant 0 : i32
    return %arg0, %c0_i32 : i32, i32
  }
  func.func @transform_10(%arg0: i32) -> (i32, i32) {
    %c0_i32 = arith.constant 0 : i32
    %c0_i32_0 = arith.constant 0 : i32
    return %arg0, %c0_i32 : i32, i32
  }
}

</mosaic_0001>

<bundles_post_ra>
// kernel: stacked_autoencoder_forward.1
= control target key start
LH: loop header
LB: loop body
LE: loop exit
PB: predicated region body
PF: predicated region fallthrough
CT: control target
= control target key end

     0   :  { %s3031_s0 = inlined_call_operand.hbm [shape: f32[256,128], index: 0, kind: input, shape index: {}]   ;;  %s3032_s1 = inlined_call_operand.hbm [shape: bf16[128,256], index: 1, kind: input, shape index: {}]   ;;  %s3033_s2 = inlined_call_operand.vmem [shape: f32[1,256], index: 2, kind: input, shape index: {}]   ;;  %s3034_s3 = inlined_call_operand.hbm [shape: bf16[256,128], index: 3, kind: input, shape index: {}]   ;;  %s3035_s4 = inlined_call_operand.vmem [shape: f32[1,128], index: 4, kind: input, shape index: {}]   ;;  %s3036_s5 = inlined_call_operand.hbm [shape: bf16[128,256], index: 5, kind: input, shape index: {}]   ;;  %s3037_s6 = inlined_call_operand.vmem [shape: f32[1,256], index: 6, kind: input, shape index: {}]   ;;  %s3038_s7 = inlined_call_operand.hbm [shape: bf16[256,128], index: 7, kind: input, shape index: {}]   ;;  %s3039_s8 = inlined_call_operand.vmem [shape: f32[1,128], index: 8, kind: input, shape index: {}]   ;;  %s3040_s9 = inlined_call_operand.vmem [shape: f32[256,128], index: 9, kind: output, shape index: {0}]   ;;  %s3041_s10 = inlined_call_operand.hbm [shape: f32[256,128], index: 10, kind: output, shape index: {1}]  }
   0x1   :  { %3050 = sst [smem:[#allocation18_spill]] %s3039_s8 }
   0x2   :  { %3051 = sst [smem:[#allocation19_spill]] %s3041_s10 }
   0x3   :  { %16 = vsyncpa [#allocation3], 0 }
   0x4   :  { %18 = vsyncpa [#allocation3 + $0x1], 0 }
   0x5   :  { %19 = vsyncpa [#allocation6], 0 }
   0x6   :  { %20 = vsyncpa [#allocation9], 0 }
   0x7   :  { %21 = vsyncpa [#allocation4], 0 }
   0x8   :  { %23 = vsyncpa [#allocation4 + $0x1], 0  ;;  %s2534_s13 = smov 0   ;;  %s2536_s14 = smov 0  }
   0x9   :  { %s2538_s15 = smov 0   ;;  %s2540_s16 = smov 0  }
   0xa LB: > { %3052 = sst [smem:[#allocation16_spill]] %s2452_s13  ;;  %s2555_s17 = sadd.s32 4294967295, %s2464_s16   ;;  %s2464_s16 = sphi %s2540_s16, %s3079_s16   ;;  %s2460_s15 = sphi %s2538_s15, %s3078_s15   ;;  %s2456_s14 = sphi %s2536_s14, %s3077_s14   ;;  %s2452_s13 = sphi %s2534_s13, %s3076_s13  }
   0xb   : > { %s1774_s18 = sadd.s32 4294967294, %s2464_s16   ;;  %p49_p0 = scmp.ne.s32.totalorder %s2456_s14, %s2452_s13 }
   0xc   : > { %p3042_p1 = scmp.eq.s32.totalorder %s2555_s17, 0  ;;  %p273_p3 = scmp.eq.s32.totalorder %s1774_s18, 1 }
   0xd   : > { %p1775_p5 = scmp.ge.s32.totalorder %s2464_s16, 1  ;;  %p280_p7 = scmp.lt.s32.totalorder %s2464_s16, 3 }
   0xe   : > { %p2564_p4 = por %p3042_p1, %p49_p0  ;;  %p2569_p6 = por %p273_p3, %p49_p0 }
   0xf   : > { %p2574_p8 = pnand %p1775_p5, %p280_p7  ;;  %s2466_s22 = smov [#allocation5]  }
  0x10   : > { %s3053_s19 = scalar_select %p2564_p4, 1, 0 }
  0x11   : > { %s3054_s20 = scalar_select %p2569_p6, 1, 0 }
  0x12   : > { %s3056_s21 = scalar_select %p2574_p8, 1, 0 }
  0x13   : > { %3055 = sst [smem:[#allocation17_spill]] %s3054_s20  ;;  %s292_s23 = sshll.u32 %s2466_s22, 4  ;;  %s2578_s23 = int_to_ptr.vmem [resolvable:$true] %s292_s23 }
  0x14   : > { %p2030_p9 = pneg %p2574_p8  ;;  %s2467_s25 = smov [#allocation8]  }
  0x15   : > { %s324_s26 = sshll.u32 %s2467_s25, 4  ;;  %s2468_s27 = smov [#allocation7]   ;;  %s2589_s26 = int_to_ptr.vmem [resolvable:$true] %s324_s26 }
  0x16   : > { %p2585_p11 = pnand %p2030_p9, %p3042_p1  ;;  %s2591_s28 = sshll.u32 %s2468_s27, 4  ;;  %s309_s28 = int_to_ptr.vmem [resolvable:$true] %s2591_s28 }
  0x17   : > { %s2248_s11 = scalar_lea.hbm %s3032_s1, 2048 }
  0x18   : > { %p2249_p12 = scmp.ne.s32.totalorder %s3032_s1, %s2248_s11  ;;  %p2601_p13 = pneg %p2585_p11 }
  0x19   : > { %p2255_p5 = scmp.lt.u32.totalorder %s2248_s11, %s3032_s1 }
  0x1a   : > { %p2251_p0 = pnand %p2601_p13, %p2249_p12 }
  0x1c   : > { %p2252_p3 = pneg %p2251_p0 }
  0x1e   : > { %p2257_p7 = pnand %p2255_p5, %p2252_p3 }
  0x20   : > { %2260 = shalt.err (!%p2257_p7)
}
  0x21   : > { %s2261_s29 = scalar_lea.vmem %s2578_s23, 2048  ;;  %p2269_p2 = scmp.lt.s32.totalorder %s2578_s23, %s2578_s23 }
  0x22   : > { %p2262_p9 = scmp.ne.s32.totalorder %s2578_s23, %s2261_s29  ;;  %p2270_p6 = scmp.lt.s32.totalorder %s2261_s29, %s2261_s29 }
  0x24   : > { %p2264_p10 = pnand %p2262_p9, %p2601_p13  ;;  %p2271_p12 = por %p2270_p6, %p2269_p2 }
  0x26   : > { %p2265_p1 = pneg %p2264_p10 }
  0x28   : > { %p2272_p0 = pnand %p2271_p12, %p2265_p1 }
  0x2a   : > { %2275 = shalt.err (!%p2272_p0)
}
  0x2b   : > { %s3048_s30 = smov 128   ;;  %s3049_s11 = smov 8  }
  0x2c   : > { %2033 = dma.hbm_to_vmem [thread:$0]  (!%p2585_p11), %s3032_s1, 2048, %s2578_s23, [#allocation6], %s3048_s30, %s3048_s30, %s3049_s11  }
  0x2d   : > { %s2276_s29 = scalar_lea.hbm %s3036_s5, 2048 }
  0x2e   : > { %p2277_p1 = scmp.ne.s32.totalorder %s3036_s5, %s2276_s29  ;;  %p2283_p10 = scmp.lt.u32.totalorder %s2276_s29, %s3036_s5 }
  0x30   : > { %p2279_p2 = pnand %p2277_p1, %p2601_p13 }
  0x32   : > { %p2280_p6 = pneg %p2279_p2 }
  0x34   : > { %p2285_p3 = pnand %p2283_p10, %p2280_p6 }
  0x36   : > { %2288 = shalt.err (!%p2285_p3)
}
  0x37   : > { %s2289_s23 = scalar_lea.vmem %s2589_s26, 2048  ;;  %p2297_p12 = scmp.lt.s32.totalorder %s2589_s26, %s2589_s26 }
  0x38   : > { %p2290_p5 = scmp.ne.s32.totalorder %s2589_s26, %s2289_s23  ;;  %p2298_p0 = scmp.lt.s32.totalorder %s2289_s23, %s2289_s23 }
  0x3a   : > { %p2292_p7 = pnand %p2290_p5, %p2601_p13  ;;  %p2299_p1 = por %p2298_p0, %p2297_p12 }
  0x3c   : > { %p2293_p9 = pneg %p2292_p7 }
  0x3e   : > { %p2300_p2 = pnand %p2299_p1, %p2293_p9 }
  0x40   : > { %2303 = shalt.err (!%p2300_p2)
}
  0x41   : > { %2039 = dma.hbm_to_vmem [thread:$0]  (!%p2585_p11), %s3036_s5, 2048, %s2589_s26, [#allocation9], %s3048_s30, %s3048_s30, %s3049_s11  }
  0x42   : > { %s2304_s12 = scalar_lea.hbm %s3034_s3, 2048 }
  0x43   : > { %p2305_p6 = scmp.ne.s32.totalorder %s3034_s3, %s2304_s12  ;;  %p2311_p5 = scmp.lt.u32.totalorder %s2304_s12, %s3034_s3 }
  0x45   : > { %p2307_p10 = pnand %p2305_p6, %p2601_p13 }
  0x47   : > { %p2308_p3 = pneg %p2307_p10 }
  0x49   : > { %p2313_p7 = pnand %p2311_p5, %p2308_p3 }
  0x4b   : > { %2316 = shalt.err (!%p2313_p7)
}
  0x4c   : > { %s2317_s23 = scalar_lea.vmem %s309_s28, 2048  ;;  %p2325_p1 = scmp.lt.s32.totalorder %s309_s28, %s309_s28 }
  0x4d   : > { %p2318_p9 = scmp.ne.s32.totalorder %s309_s28, %s2317_s23  ;;  %p2326_p2 = scmp.lt.s32.totalorder %s2317_s23, %s2317_s23 }
  0x4f   : > { %p2320_p12 = pnand %p2318_p9, %p2601_p13  ;;  %p2327_p4 = por %p2326_p2, %p2325_p1 }
  0x51   : > { %p2321_p0 = pneg %p2320_p12 }
  0x53   : > { %p2328_p8 = pnand %p2327_p4, %p2321_p0 }
  0x55   : > { %2331 = shalt.err (!%p2328_p8)
}
  0x56   : > { %s2471_s26 = smov 64   ;;  %s2472_s8 = smov 4  }
  0x57   : > { %2036 = dma.hbm_to_vmem [thread:$0]  (!%p2585_p11), %s3034_s3, 2048, %s309_s28, [#allocation6], %s2471_s26, %s2471_s26, %s2472_s8  }
  0x58   : > { %s2473_s20 = smov [#allocation10]   ;;  %s2332_s27 = scalar_lea.hbm %s3038_s7, 2048 }
  0x59   : > { %s340_s12 = sshll.u32 %s2473_s20, 4  ;;  %p2333_p4 = scmp.ne.s32.totalorder %s3038_s7, %s2332_s27  ;;  %s341_s12 = int_to_ptr.vmem [resolvable:$true] %s340_s12 }
  0x5a   : > { %p2339_p10 = scmp.lt.u32.totalorder %s2332_s27, %s3038_s7 }
  0x5b   : > { %p2335_p8 = pnand %p2333_p4, %p2601_p13 }
  0x5d   : > { %p2336_p6 = pneg %p2335_p8 }
  0x5f   : > { %p2341_p3 = pnand %p2339_p10, %p2336_p6 }
  0x61   : > { %2344 = shalt.err (!%p2341_p3)
}
  0x62   : > { %s2345_s28 = scalar_lea.vmem %s341_s12, 2048  ;;  %p2353_p12 = scmp.lt.s32.totalorder %s341_s12, %s341_s12 }
  0x63   : > { %p2346_p5 = scmp.ne.s32.totalorder %s341_s12, %s2345_s28  ;;  %p2354_p0 = scmp.lt.s32.totalorder %s2345_s28, %s2345_s28 }
  0x65   : > { %p2348_p7 = pnand %p2346_p5, %p2601_p13  ;;  %p2355_p1 = por %p2354_p0, %p2353_p12 }
  0x67   : > { %p2349_p9 = pneg %p2348_p7 }
  0x69   : > { %p2356_p2 = pnand %p2355_p1, %p2349_p9 }
  0x6b   : > { %2359 = shalt.err (!%p2356_p2)
}
  0x6c   : > { %2042 = dma.hbm_to_vmem [thread:$0]  (!%p2585_p11), %s3038_s7, 2048, %s341_s12, [#allocation9], %s2471_s26, %s2471_s26, %s2472_s8  }
  0x6d   : > { %s2689_s22 = sadd.s32 1, %s2464_s16   ;;  %s36_s30 = sadd.s32 1, %s2460_s15 }
  0x6e   : > { %s33_s24 = ssub.s32 %s2464_s16, %s2689_s22  ;;  %p43_p13 = scmp.ne.s32.totalorder %s2460_s15, %s2456_s14 }
  0x6f   : > { %p34_p4 = scmp.eq.s32.totalorder %s33_s24, 0  ;;  %p44_p8 = scmp.eq.s32.totalorder %s2464_s16, 0 }
  0x70   : > { %p3059_p6 = scmp.eq.s32.totalorder %s2555_s17, 1  ;;  %p2055_p3 = scmp.lt.s32.totalorder %s2464_s16, 2 }
  0x71   : > { %s2705_s20 = scalar_select %p34_p4, %s2460_s15, %s36_s30  }
  0x72   : > { %p2699_p10 = por %p3059_p6, %p43_p13  ;;  %p45_p5 = por %p44_p8, %p43_p13 }
  0x73   : > { %s357_s18 = sand.u32 1, %s2460_s15   ;;  %s1880_s26 = sshll.u32 %s2464_s16, 11 }
  0x74   : > { %s1781_s25 = sshll.u32 %s357_s18, 7  ;;  %s2712_s27 = scalar_lea.hbm %s3031_s0, %s1880_s26 }
  0x75   : > { %s361_s29 = scalar_lea.vmem [#allocation2], %s1781_s25  ;;  %p2716_p11 = pnand %p2055_p3, %p45_p5 }
  0x76   : > { %s368_s23 = sshll.u32 %s361_s29, 4  ;;  %s2720_s10 = scalar_lea.sflag [#allocation3], %s357_s18  ;;  %s2714_s23 = int_to_ptr.vmem [resolvable:$true] %s368_s23 }
  0x77   : > { %s2360_s13 = scalar_lea.hbm %s2712_s27, 2048  ;;  %p2362_p9 = pneg %p2716_p11 }
  0x78   : > { %p2361_p7 = scmp.ne.s32.totalorder %s2712_s27, %s2360_s13  ;;  %s2365_s25 = scalar_lea.hbm %s3031_s0, 4096 }
  0x79   : > { %p2366_p1 = scmp.lt.u32.totalorder %s2712_s27, %s3031_s0  ;;  %p2367_p2 = scmp.lt.u32.totalorder %s2365_s25, %s2360_s13 }
  0x7a   : > { %p2363_p12 = pnand %p2362_p9, %p2361_p7  ;;  %p2369_p4 = scmp.lt.u32.totalorder %s2360_s13, %s2712_s27 }
  0x7b   : > { %p2368_p13 = por %p2367_p2, %p2366_p1 }
  0x7c   : > { %p2364_p0 = pneg %p2363_p12 }
  0x7d   : > { %p2370_p8 = por %p2369_p4, %p2368_p13 }
  0x7f   : > { %p2371_p6 = pnand %p2370_p8, %p2364_p0 }
  0x81   : > { %2374 = shalt.err (!%p2371_p6)
}
  0x82   : > { %s2375_s18 = scalar_lea.vmem %s2714_s23, 2048  ;;  %s2474_s12 = smov [#allocation2]  }
  0x83   : > { %p2376_p3 = scmp.ne.s32.totalorder %s2714_s23, %s2375_s18  ;;  %s2380_s29 = sshll.u32 %s2474_s12, 4  ;;  %s2381_s29 = int_to_ptr.vmem [resolvable:$false] %s2380_s29 }
  0x84   : > { %s2382_s30 = scalar_lea.vmem %s2381_s29, 4096  ;;  %p2383_p12 = scmp.lt.s32.totalorder %s2714_s23, %s2381_s29 }
  0x85   : > { %p2378_p5 = pnand %p2376_p3, %p2362_p9  ;;  %p2384_p1 = scmp.lt.s32.totalorder %s2382_s30, %s2375_s18 }
  0x87   : > { %p2379_p7 = pneg %p2378_p5  ;;  %p2385_p2 = por %p2384_p1, %p2383_p12 }
  0x89   : > { %p2386_p13 = pnand %p2385_p2, %p2379_p7 }
  0x8b   : > { %2389 = shalt.err (!%p2386_p13)
}
  0x8c   : > { %s3062_s13 = smov 8   ;;  %s3063_s24 = smov 128  }
  0x8d   : > { %2046 = dma.hbm_to_vmem [thread:$0]  (!%p2716_p11), %s2712_s27, 2048, %s2714_s23, %s2720_s10, %s3063_s24, %s3063_s24, %s3062_s13  }
  0x8e   : > { %p3064_p9 = scmp.ne.s32.totalorder %s3056_s21, 0 }
  0x8f   : > { %s2754_s25 = sand.u32 (!%p3064_p9), 1, %s2456_s14   ;;  %p3065_p0 = scmp.ne.s32.totalorder (!%p3064_p9), %s3053_s19, 0 }
  0x90   : > { %380 = sbr.rel (%p3064_p9) target bundleno = 1173 (0x495), region = 56  ;;  %s1785_s26 = sshll.u32 (!%p3064_p9), %s2754_s25, 7 }
  0x91   : > { %s383_s8 = scalar_lea.sflag (!%p3064_p9), [#allocation3], %s2754_s25  ;;  %s2760_s28 = scalar_lea.vmem (!%p3064_p9), [#allocation2], %s1785_s26 }
  0x97   : > { %2435 = dma.done.wait (%p3065_p0), %s383_s8, 2048  }
  0x98   : > { %2437 = vsyncadd (%p3065_p0), %s383_s8, 4294965248  ;;  %p3066_p11 = scmp.eq.s32.totalorder %s2555_s17, 0 }
  0x9a   : > { %2439 = dma.done.wait (%p3066_p11), [#allocation6], 4096   ;;  %p3067_p4 = pmov %p3066_p11 }
  0x9c   : > { %2441 = vsyncadd (%p3067_p4), [#allocation6], 4294963200  ;;  %p3068_p8 = pmov %p3067_p4 }
  0x9d   : > { %p3069_p6 = pmov %p3067_p4 }
  0x9e   : > { %2443 = dma.done.wait (%p3068_p8), [#allocation9], 4096  }
  0x9f   : > { %2445 = vsyncadd (%p3069_p6), [#allocation9], 4294963200  ;;  %v2475_v0 = vmov 0   ;;  %v2104_v1 = vld [vmem:[#allocation5 + $0x4] ss:$8 sps:$4 sm:$0xff]   ;;  %v2132_v18 = vld [vmem:[#allocation7 + $0x50] sm:$0xff]  }
  0xa0   : > { %617 = vmatprep.mubr.bf16.mxu0 %v2475_v0  ;;  %v2106_v2 = vld [vmem:[#allocation5] ss:$8 sps:$4 sm:$0xff]   ;;  %585 = vmatprep.subr.bf16.mxu0 %v2104_v1  ;;  %v2107_v3 = vld [vmem:[#allocation5 + $0x14] ss:$8 sps:$4 sm:$0xff]   ;;  %v2109_v4 = vld [vmem:[#allocation5 + $0x10] ss:$8 sps:$4 sm:$0xff]  }
  0xa1   : > { %586 = vmatpush1.bf16.msra.mxu0 %v2106_v2  ;;  %v2110_v5 = vld [vmem:[#allocation5 + $0x24] ss:$8 sps:$4 sm:$0xff]   ;;  %v2112_v6 = vld [vmem:[#allocation5 + $0x20] ss:$8 sps:$4 sm:$0xff]   ;;  %v2113_v7 = vld [vmem:[#allocation5 + $0x34] ss:$8 sps:$4 sm:$0xff]  }
  0xa2   : > { %587 = vmatprep.subr.bf16.mxu0 %v2107_v3  ;;  %v2115_v8 = vld [vmem:[#allocation5 + $0x30] ss:$8 sps:$4 sm:$0xff]   ;;  %v2116_v9 = vld [vmem:[#allocation5 + $0x44] ss:$8 sps:$4 sm:$0xff]   ;;  %v2118_v10 = vld [vmem:[#allocation5 + $0x40] ss:$8 sps:$4 sm:$0xff]  }
  0xa3   : > { %v2119_v11 = vld [vmem:[#allocation5 + $0x54] ss:$8 sps:$4 sm:$0xff]   ;;  %v2128_v12 = vld [vmem:[#allocation7 + $0x40] sm:$0xff]   ;;  %v2121_v13 = vld [vmem:[#allocation5 + $0x50] ss:$8 sps:$4 sm:$0xff]   ;;  %s1791_s27 = sshll.u32 %s2555_s17, 4 }
  0xa4   : > { %v2129_v14 = vld [vmem:[#allocation7] sm:$0xff]   ;;  %1882 = vmatprep.subr.bf16.mxu1 %v2128_v12  ;;  %v2130_v16 = vld [vmem:[#allocation7 + $0x48] sm:$0xff]   ;;  %v2125_v20 = vld [vmem:[#allocation5 + $0x74] ss:$8 sps:$4 sm:$0xff]   ;;  %p446_p3 = scmp.lt.s32.totalorder %s1791_s27, 31  ;;  %s3070_s19 = sld [smem:[#allocation18_spill]] }
  0xa5   : > { %588 = vmatpush1.bf16.msra.mxu0 %v2109_v4  ;;  %v2122_v15 = vld [vmem:[#allocation5 + $0x64] ss:$8 sps:$4 sm:$0xff]   ;;  %1883 = vmatpush3.bf16.msra.mxu1 %v2129_v14  ;;  %v2124_v19 = vld [vmem:[#allocation5 + $0x60] ss:$8 sps:$4 sm:$0xff]   ;;  %v2133_v21 = vld [vmem:[#allocation7 + $0x10] sm:$0xff]   ;;  %s2954_s21 = scalar_lea.vmem [#allocation11], %s1785_s26 }
  0xa6   : > { %589 = vmatprep.subr.bf16.mxu0 %v2110_v5  ;;  %v2131_v17 = vld [vmem:[#allocation7 + $0x8] sm:$0xff]   ;;  %1884 = vmatprep.subr.bf16.mxu1 %v2130_v16  ;;  %v2134_v22 = vld [vmem:[#allocation7 + $0x58] sm:$0xff]   ;;  %v453_v24 = vld [vmem:[%s2760_s28] sm:$0xff]  ;;  %s3081_s27 = smov (!%p446_p3, %s1791_s27), 31  ;;  %s1881_s26 = sshll.u32 %s2555_s17, 11 }
  0xa7   : > { %v2127_v23 = vld [vmem:[#allocation5 + $0x70] ss:$8 sps:$4 sm:$0xff]   ;;  %v454_v25 = vld [vmem:[%s2760_s28 + $0x8] sm:$0xff]  ;;  %v2136_v27 = vld [vmem:[#allocation7 + $0x60] sm:$0xff]   ;;  %s1792_s23 = sshll.u32 %s3081_s27, 3  ;;  %s1638_s27 = sshll.u32 %s2954_s21, 4  ;;  %s2985_s27 = int_to_ptr.vmem [resolvable:$true] %s1638_s27 }
  0xa8   : > { %v2135_v26 = vld [vmem:[#allocation7 + $0x18] sm:$0xff]   ;;  %v2137_v28 = vld [vmem:[#allocation7 + $0x20] sm:$0xff]   ;;  %v469_v29 = vpack.c.bf16 %v454_v25, %v453_v24  ;;  %v2138_v30 = vld [vmem:[#allocation7 + $0x68] sm:$0xff]   ;;  %s2855_s30 = scalar_lea.vmem %s3040_s9, %s1792_s23  ;;  %s3071_s18 = sld [smem:[#allocation19_spill]] }
  0xa9   : > { %590 = vmatpush1.bf16.msra.mxu0 %v2112_v6  ;;  %1885 = vmatpush3.bf16.msra.mxu1 %v2131_v17  ;;  %v455_v31 = vld [vmem:[%s2760_s28 + $0x10] sm:$0xff]  ;;  %v456_v32 = vld [vmem:[%s2760_s28 + $0x18] sm:$0xff]  ;;  %v457_v34 = vld [vmem:[%s2760_s28 + $0x20] sm:$0xff]  ;;  %s1621_s29 = scalar_lea.sflag [#allocation4], %s2754_s25  ;;  %s2476_s17 = smov [#allocation11]  }
  0xaa   : > { %591 = vmatprep.subr.bf16.mxu0 %v2113_v7  ;;  %1886 = vmatprep.subr.bf16.mxu1 %v2132_v18  ;;  %v470_v33 = vpack.c.bf16 %v456_v32, %v455_v31  ;;  %v458_v35 = vld [vmem:[%s2760_s28 + $0x28] sm:$0xff]  ;;  %v459_v37 = vld [vmem:[%s2760_s28 + $0x30] sm:$0xff]  ;;  %v460_v38 = vld [vmem:[%s2760_s28 + $0x38] sm:$0xff]  ;;  %s2394_s13 = sshll.u32 %s2476_s17, 4  ;;  %s2395_s13 = int_to_ptr.vmem [resolvable:$false] %s2394_s13 }
  0xab   : > { %v471_v36 = vpack.c.bf16 %v458_v35, %v457_v34  ;;  %v472_v39 = vpack.c.bf16 %v460_v38, %v459_v37  ;;  %v461_v40 = vld [vmem:[%s2760_s28 + $0x40] sm:$0xff]  ;;  %v462_v41 = vld [vmem:[%s2760_s28 + $0x48] sm:$0xff]  ;;  %v463_v43 = vld [vmem:[%s2760_s28 + $0x50] sm:$0xff]  ;;  %s2396_s24 = scalar_lea.vmem %s2395_s13, 4096  ;;  %p2397_p1 = scmp.lt.s32.totalorder %s2985_s27, %s2395_s13 }
  0xac   : > { %v473_v42 = vpack.c.bf16 %v462_v41, %v461_v40  ;;  %v464_v44 = vld [vmem:[%s2760_s28 + $0x58] sm:$0xff]  ;;  %v465_v46 = vld [vmem:[%s2760_s28 + $0x60] sm:$0xff]  ;;  %v466_v47 = vld [vmem:[%s2760_s28 + $0x68] sm:$0xff] }
  0xad   : > { %592 = vmatpush1.bf16.msra.mxu0 %v2115_v8  ;;  %1887 = vmatpush3.bf16.msra.mxu1 %v2133_v21  ;;  %v474_v45 = vpack.c.bf16 %v464_v44, %v463_v43  ;;  %v475_v48 = vpack.c.bf16 %v466_v47, %v465_v46  ;;  %v467_v49 = vld [vmem:[%s2760_s28 + $0x70] sm:$0xff]  ;;  %v468_v50 = vld [vmem:[%s2760_s28 + $0x78] sm:$0xff]  ;;  %v2139_v52 = vld [vmem:[#allocation7 + $0x28] sm:$0xff]   ;;  %v495_v8 = vlaneseq }
  0xae   : > { %593 = vmatprep.subr.bf16.mxu0 %v2116_v9  ;;  %1888 = vmatprep.subr.bf16.mxu1 %v2134_v22  ;;  %v476_v51 = vpack.c.bf16 %v468_v50, %v467_v49  ;;  %v2140_v53 = vld [vmem:[#allocation7 + $0x70] sm:$0xff]   ;;  %v2142_v55 = vld [vmem:[#allocation7 + $0x78] sm:$0xff]   ;;  %v2144_v57 = vld [vmem:[#allocation8] ss:$8 sps:$4 sm:$0xff]   ;;  %s2983_s12 = scalar_lea.hbm %s3071_s18, %s1881_s26 }
  0xaf   : > { %v2141_v54 = vld [vmem:[#allocation7 + $0x30] sm:$0xff]   ;;  %v2143_v56 = vld [vmem:[#allocation7 + $0x38] sm:$0xff]   ;;  %v2146_v58 = vld [vmem:[#allocation8 + $0x4] ss:$8 sps:$4 sm:$0xff]   ;;  %v2799_v9 = vshrl.u32 %v495_v8, 7 }
  0xb0   : > { %v2149_v59 = vld [vmem:[#allocation8 + $0x14] ss:$8 sps:$4 sm:$0xff]   ;;  %v2147_v60 = vld [vmem:[#allocation8 + $0x10] ss:$8 sps:$4 sm:$0xff]   ;;  %v2152_v61 = vld [vmem:[#allocation8 + $0x24] ss:$8 sps:$4 sm:$0xff]  }
  0xb1   : > { %594 = vmatpush1.bf16.msra.mxu0 %v2118_v10  ;;  %1889 = vmatpush3.bf16.msra.mxu1 %v2135_v26  ;;  %v2150_v62 = vld [vmem:[#allocation8 + $0x20] ss:$8 sps:$4 sm:$0xff]   ;;  %v2155_v63 = vld [vmem:[#allocation8 + $0x34] ss:$8 sps:$4 sm:$0xff]   ;;  %v2153_v1 = vld [vmem:[#allocation8 + $0x30] ss:$8 sps:$4 sm:$0xff]  }
  0xb2   : > { %595 = vmatprep.subr.bf16.mxu0 %v2119_v11  ;;  %1890 = vmatprep.subr.bf16.mxu1 %v2136_v27  ;;  %v2158_v2 = vld [vmem:[#allocation8 + $0x44] ss:$8 sps:$4 sm:$0xff]   ;;  %v2156_v3 = vld [vmem:[#allocation8 + $0x40] ss:$8 sps:$4 sm:$0xff]   ;;  %v2161_v4 = vld [vmem:[#allocation8 + $0x54] ss:$8 sps:$4 sm:$0xff]  }
  0xb3   : > { %v2159_v5 = vld [vmem:[#allocation8 + $0x50] ss:$8 sps:$4 sm:$0xff]   ;;  %v2164_v6 = vld [vmem:[#allocation8 + $0x64] ss:$8 sps:$4 sm:$0xff]   ;;  %v2162_v7 = vld [vmem:[#allocation8 + $0x60] ss:$8 sps:$4 sm:$0xff]  }
  0xb4   : > { %v497_v10 = vsub.s32 0, %v2799_v9  ;;  %v493_v11 = vld [vmem:[%s3033_s2] sm:$0x3]  ;;  %v501_v12 = vsub.s32 1, %v2799_v9 }
  0xb5   : > { %596 = vmatpush1.bf16.msra.mxu0 %v2121_v13  ;;  %1891 = vmatpush3.bf16.msra.mxu1 %v2137_v28 }
  0xb6   : > { %597 = vmatprep.subr.bf16.mxu0 %v2122_v15  ;;  %1892 = vmatprep.subr.bf16.mxu1 %v2138_v30  ;;  %v2808_v13 = vrot.slane %v493_v11, %v497_v10  ;;  %v2812_v14 = vrot.slane %v493_v11, %v501_v12 }
  0xb9   : > { %598 = vmatpush1.bf16.msra.mxu0 %v2124_v19  ;;  %1893 = vmatpush3.bf16.msra.mxu1 %v2139_v52 }
  0xba   : > { %599 = vmatprep.subr.bf16.mxu0 %v2125_v20  ;;  %1894 = vmatprep.subr.bf16.mxu1 %v2140_v53 }
  0xbd   : > { %600 = vmatpush1.bf16.msra.mxu0 %v2127_v23  ;;  %1895 = vmatpush3.bf16.msra.mxu1 %v2141_v54 }
  0xbe   : > { %1896 = vmatprep.subr.bf16.mxu1 %v2142_v55  ;;  %1094 = vmatprep.subr.bf16.mxu0 %v2146_v58 }
  0xc0   : > { %618 = vmatmul.mubr.bf16.vlgmr.msra.gmra.mrb[0].mxu0 %v469_v29 }
  0xc1   : > { %627 = vmatprep.mubr.bf16.mxu0 %v2475_v0  ;;  %1897 = vmatpush3.bf16.msra.mxu1 %v2143_v56 }
  0xc2   : > { %1095 = vmatpush1.bf16.msra.mxu0 %v2144_v57 }
  0xc3   : > { %1096 = vmatprep.subr.bf16.mxu0 %v2149_v59 }
  0xc6   : > { %1097 = vmatpush1.bf16.msra.mxu0 %v2147_v60 }
  0xc7   : > { %1098 = vmatprep.subr.bf16.mxu0 %v2152_v61 }
  0xc8   : > { %628 = vmatmul.mubr.bf16.gmra.mrb[4].mxu0 %v470_v33 }
  0xc9   : > { %637 = vmatprep.mubr.bf16.mxu0 %v2475_v0 }
  0xca   : > { %1099 = vmatpush1.bf16.msra.mxu0 %v2150_v62 }
  0xcb   : > { %1100 = vmatprep.subr.bf16.mxu0 %v2155_v63 }
  0xce   : > { %1101 = vmatpush1.bf16.msra.mxu0 %v2153_v1 }
  0xcf   : > { %1102 = vmatprep.subr.bf16.mxu0 %v2158_v2 }
  0xd0   : > { %638 = vmatmul.mubr.bf16.gmra.mrb[8].mxu0 %v471_v36 }
  0xd1   : > { %647 = vmatprep.mubr.bf16.mxu0 %v2475_v0 }
  0xd2   : > { %1103 = vmatpush1.bf16.msra.mxu0 %v2156_v3 }
  0xd3   : > { %1104 = vmatprep.subr.bf16.mxu0 %v2161_v4 }
  0xd6   : > { %1105 = vmatpush1.bf16.msra.mxu0 %v2159_v5 }
  0xd7   : > { %1106 = vmatprep.subr.bf16.mxu0 %v2164_v6 }
  0xd8   : > { %648 = vmatmul.mubr.bf16.gmra.mrb[12].mxu0 %v472_v39 }
  0xd9   : > { %657 = vmatprep.mubr.bf16.mxu0 %v2475_v0 }
  0xda   : > { %1107 = vmatpush1.bf16.msra.mxu0 %v2162_v7 }
  0xe0   : > { %658 = vmatmul.mubr.bf16.gmra.mrb[16].mxu0 %v473_v42 }
  0xe1   : > { %667 = vmatprep.mubr.bf16.mxu0 %v2475_v0 }
  0xe8   : > { %668 = vmatmul.mubr.bf16.gmra.mrb[20].mxu0 %v474_v45 }
  0xe9   : > { %677 = vmatprep.mubr.bf16.mxu0 %v2475_v0 }
  0xf0   : > { %678 = vmatmul.mubr.bf16.gmra.mrb[24].mxu0 %v475_v48 }
  0xf1   : > { %687 = vmatprep.mubr.bf16.mxu0 %v2475_v0 }
  0xf8   : > { %688 = vmatmul.mubr.bf16.gmra.mrb[28].mxu0 %v476_v51 }
  0xf9   : > { %1126 = vmatprep.mubr.bf16.mxu0 %v2475_v0 }
 0x193   : > { %v619_v15 = vpop.f32.mrb[0].mxu0 }
 0x194   : > { %v620_v16 = vadd.f32 %v619_v15, %v2808_v13  ;;  %v621_v17 = vpop.f32.mrb[1].mxu0 }
 0x195   : > { %v622_v18 = vadd.f32 %v621_v17, %v2812_v14  ;;  %v623_v19 = vpop.f32.mrb[2].mxu0 }
 0x196   : > { %v624_v20 = vadd.f32 %v623_v19, %v2808_v13  ;;  %v625_v21 = vpop.f32.mrb[3].mxu0  ;;  %v698_v23 = vmax.f32 %v620_v16, 0.0 }
 0x197   : > { %v626_v22 = vadd.f32 %v625_v21, %v2812_v14  ;;  %v699_v25 = vmax.f32 %v622_v18, 0.0 }
 0x198   : > { %v700_v24 = vmax.f32 %v624_v20, 0.0 }
 0x199   : > { %v701_v26 = vmax.f32 %v626_v22, 0.0 }
 0x19a   : > { %v730_v27 = vpack.c.bf16 %v700_v24, %v698_v23 }
 0x19b   : > { %v629_v28 = vpop.f32.mrb[4].mxu0  ;;  %v731_v29 = vpack.c.bf16 %v701_v26, %v699_v25 }
 0x19c   : > { %v630_v30 = vadd.f32 %v629_v28, %v2808_v13  ;;  %v631_v31 = vpop.f32.mrb[5].mxu0 }
 0x19d   : > { %v632_v32 = vadd.f32 %v631_v31, %v2812_v14  ;;  %v633_v33 = vpop.f32.mrb[6].mxu0  ;;  %913 = vmatprep.mubr.bf16.mxu1 %v731_v29 }
 0x19e   : > { %v634_v34 = vadd.f32 %v633_v33, %v2808_v13  ;;  %v635_v35 = vpop.f32.mrb[7].mxu0  ;;  %914 = vmatmul.mubr.bf16.vlgmr.msra.gmra.mrb[0].mxu1 %v730_v27  ;;  %v702_v37 = vmax.f32 %v630_v30, 0.0 }
 0x19f   : > { %v636_v36 = vadd.f32 %v635_v35, %v2812_v14  ;;  %v703_v39 = vmax.f32 %v632_v32, 0.0 }
 0x1a0   : > { %v704_v38 = vmax.f32 %v634_v34, 0.0 }
 0x1a1   : > { %v705_v40 = vmax.f32 %v636_v36, 0.0 }
 0x1a2   : > { %v732_v41 = vpack.c.bf16 %v704_v38, %v702_v37 }
 0x1a3   : > { %v733_v42 = vpack.c.bf16 %v705_v40, %v703_v39  ;;  %v639_v43 = vpop.f32.mrb[8].mxu0 }
 0x1a4   : > { %v640_v44 = vadd.f32 %v639_v43, %v2808_v13  ;;  %v641_v45 = vpop.f32.mrb[9].mxu0 }
 0x1a5   : > { %v642_v46 = vadd.f32 %v641_v45, %v2812_v14  ;;  %v643_v47 = vpop.f32.mrb[10].mxu0  ;;  %921 = vmatprep.mubr.bf16.mxu1 %v733_v42 }
 0x1a6   : > { %v644_v48 = vadd.f32 %v643_v47, %v2808_v13  ;;  %v645_v49 = vpop.f32.mrb[11].mxu0  ;;  %922 = vmatmul.mubr.bf16.gmra.mrb[4].mxu1 %v732_v41  ;;  %v706_v51 = vmax.f32 %v640_v44, 0.0 }
 0x1a7   : > { %v646_v50 = vadd.f32 %v645_v49, %v2812_v14  ;;  %v707_v53 = vmax.f32 %v642_v46, 0.0 }
 0x1a8   : > { %v708_v52 = vmax.f32 %v644_v48, 0.0 }
 0x1a9   : > { %v709_v54 = vmax.f32 %v646_v50, 0.0 }
 0x1aa   : > { %v734_v55 = vpack.c.bf16 %v708_v52, %v706_v51 }
 0x1ab   : > { %v735_v56 = vpack.c.bf16 %v709_v54, %v707_v53  ;;  %v649_v57 = vpop.f32.mrb[12].mxu0 }
 0x1ac   : > { %v650_v58 = vadd.f32 %v649_v57, %v2808_v13  ;;  %v651_v59 = vpop.f32.mrb[13].mxu0 }
 0x1ad   : > { %v652_v60 = vadd.f32 %v651_v59, %v2812_v14  ;;  %v653_v61 = vpop.f32.mrb[14].mxu0  ;;  %929 = vmatprep.mubr.bf16.mxu1 %v735_v56 }
 0x1ae   : > { %v654_v62 = vadd.f32 %v653_v61, %v2808_v13  ;;  %v655_v63 = vpop.f32.mrb[15].mxu0  ;;  %930 = vmatmul.mubr.bf16.gmra.mrb[8].mxu1 %v734_v55  ;;  %v710_v2 = vmax.f32 %v650_v58, 0.0 }
 0x1af   : > { %v656_v1 = vadd.f32 %v655_v63, %v2812_v14  ;;  %v711_v4 = vmax.f32 %v652_v60, 0.0 }
 0x1b0   : > { %v712_v3 = vmax.f32 %v654_v62, 0.0 }
 0x1b1   : > { %v713_v5 = vmax.f32 %v656_v1, 0.0 }
 0x1b2   : > { %v736_v6 = vpack.c.bf16 %v712_v3, %v710_v2 }
 0x1b3   : > { %v737_v7 = vpack.c.bf16 %v713_v5, %v711_v4  ;;  %v659_v8 = vpop.f32.mrb[16].mxu0 }
 0x1b4   : > { %v660_v11 = vadd.f32 %v659_v8, %v2808_v13  ;;  %v661_v15 = vpop.f32.mrb[17].mxu0  ;;  %v2168_v8 = vld [vmem:[#allocation10 + $0x40] sm:$0xff]  }
 0x1b5   : > { %v662_v16 = vadd.f32 %v661_v15, %v2812_v14  ;;  %v663_v17 = vpop.f32.mrb[18].mxu0  ;;  %937 = vmatprep.mubr.bf16.mxu1 %v737_v7  ;;  %v2165_v7 = vld [vmem:[#allocation8 + $0x70] ss:$8 sps:$4 sm:$0xff]   ;;  %v2170_v15 = vld [vmem:[#allocation10 + $0x48] sm:$0xff]   ;;  %1946 = vmatprep.subr.bf16.mxu1 %v2168_v8 }
 0x1b6   : > { %v664_v18 = vadd.f32 %v663_v17, %v2808_v13  ;;  %v665_v19 = vpop.f32.mrb[19].mxu0  ;;  %938 = vmatmul.mubr.bf16.gmra.mrb[12].mxu1 %v736_v6  ;;  %v714_v21 = vmax.f32 %v660_v11, 0.0  ;;  %v2167_v6 = vld [vmem:[#allocation8 + $0x74] ss:$8 sps:$4 sm:$0xff]   ;;  %v2169_v11 = vld [vmem:[#allocation10] sm:$0xff]  }
 0x1b7   : > { %v666_v20 = vadd.f32 %v665_v19, %v2812_v14  ;;  %v715_v23 = vmax.f32 %v662_v16, 0.0  ;;  %1108 = vmatprep.subr.bf16.mxu0 %v2167_v6  ;;  %1947 = vmatpush3.bf16.msra.mxu1 %v2169_v11  ;;  %v2173_v16 = vld [vmem:[#allocation10 + $0x10] sm:$0xff]   ;;  %v2174_v17 = vld [vmem:[#allocation10 + $0x58] sm:$0xff]   ;;  %v2176_v19 = vld [vmem:[#allocation10 + $0x60] sm:$0xff]  }
 0x1b8   : > { %v716_v22 = vmax.f32 %v664_v18, 0.0  ;;  %1109 = vmatpush1.bf16.msra.mxu0 %v2165_v7  ;;  %1948 = vmatprep.subr.bf16.mxu1 %v2170_v15  ;;  %v2175_v18 = vld [vmem:[#allocation10 + $0x18] sm:$0xff]  }
 0x1b9   : > { %v717_v24 = vmax.f32 %v666_v20, 0.0  ;;  %v2177_v20 = vld [vmem:[#allocation10 + $0x20] sm:$0xff]  }
 0x1ba   : > { %v738_v25 = vpack.c.bf16 %v716_v22, %v714_v21  ;;  %v2178_v21 = vld [vmem:[#allocation10 + $0x68] sm:$0xff]  }
 0x1bb   : > { %v739_v26 = vpack.c.bf16 %v717_v24, %v715_v23  ;;  %v669_v27 = vpop.f32.mrb[20].mxu0  ;;  %v2179_v22 = vld [vmem:[#allocation10 + $0x28] sm:$0xff]   ;;  %v2180_v23 = vld [vmem:[#allocation10 + $0x70] sm:$0xff]  }
 0x1bc   : > { %v670_v28 = vadd.f32 %v669_v27, %v2808_v13  ;;  %v671_v29 = vpop.f32.mrb[21].mxu0  ;;  %v2181_v24 = vld [vmem:[#allocation10 + $0x30] sm:$0xff]  }
 0x1bd   : > { %v672_v30 = vadd.f32 %v671_v29, %v2812_v14  ;;  %v673_v31 = vpop.f32.mrb[22].mxu0  ;;  %945 = vmatprep.mubr.bf16.mxu1 %v739_v26  ;;  %v2850_v26 = vld [vmem:[%s3035_s4] ss:$0 sm:$0xff] }
 0x1be   : > { %v674_v32 = vadd.f32 %v673_v31, %v2808_v13  ;;  %v675_v33 = vpop.f32.mrb[23].mxu0  ;;  %946 = vmatmul.mubr.bf16.gmra.mrb[16].mxu1 %v738_v25  ;;  %v718_v35 = vmax.f32 %v670_v28, 0.0 }
 0x1bf   : > { %v676_v34 = vadd.f32 %v675_v33, %v2812_v14  ;;  %v719_v37 = vmax.f32 %v672_v30, 0.0 }
 0x1c0   : > { %v720_v36 = vmax.f32 %v674_v32, 0.0 }
 0x1c1   : > { %v721_v38 = vmax.f32 %v676_v34, 0.0 }
 0x1c2   : > { %v740_v39 = vpack.c.bf16 %v720_v36, %v718_v35 }
 0x1c3   : > { %v741_v40 = vpack.c.bf16 %v721_v38, %v719_v37  ;;  %v679_v41 = vpop.f32.mrb[24].mxu0 }
 0x1c4   : > { %v680_v42 = vadd.f32 %v679_v41, %v2808_v13  ;;  %v681_v43 = vpop.f32.mrb[25].mxu0 }
 0x1c5   : > { %v682_v44 = vadd.f32 %v681_v43, %v2812_v14  ;;  %v683_v45 = vpop.f32.mrb[26].mxu0  ;;  %953 = vmatprep.mubr.bf16.mxu1 %v741_v40 }
 0x1c6   : > { %v684_v46 = vadd.f32 %v683_v45, %v2808_v13  ;;  %v685_v47 = vpop.f32.mrb[27].mxu0  ;;  %954 = vmatmul.mubr.bf16.gmra.mrb[20].mxu1 %v740_v39  ;;  %v722_v49 = vmax.f32 %v680_v42, 0.0 }
 0x1c7   : > { %v686_v48 = vadd.f32 %v685_v47, %v2812_v14  ;;  %v723_v51 = vmax.f32 %v682_v44, 0.0 }
 0x1c8   : > { %v724_v50 = vmax.f32 %v684_v46, 0.0 }
 0x1c9   : > { %v725_v52 = vmax.f32 %v686_v48, 0.0 }
 0x1ca   : > { %v742_v53 = vpack.c.bf16 %v724_v50, %v722_v49 }
 0x1cb   : > { %v743_v54 = vpack.c.bf16 %v725_v52, %v723_v51  ;;  %v689_v55 = vpop.f32.mrb[28].mxu0 }
 0x1cc   : > { %v690_v56 = vadd.f32 %v689_v55, %v2808_v13  ;;  %v691_v57 = vpop.f32.mrb[29].mxu0 }
 0x1cd   : > { %v692_v58 = vadd.f32 %v691_v57, %v2812_v14  ;;  %v693_v59 = vpop.f32.mrb[30].mxu0  ;;  %961 = vmatprep.mubr.bf16.mxu1 %v743_v54 }
 0x1ce   : > { %v694_v60 = vadd.f32 %v693_v59, %v2808_v13  ;;  %v695_v61 = vpop.f32.mrb[31].mxu0  ;;  %962 = vmatmul.mubr.bf16.gmra.mrb[24].mxu1 %v742_v53  ;;  %v726_v63 = vmax.f32 %v690_v56, 0.0  ;;  %v2171_v13 = vld [vmem:[#allocation10 + $0x8] sm:$0xff]  }
 0x1cf   : > { %v696_v62 = vadd.f32 %v695_v61, %v2812_v14  ;;  %v727_v2 = vmax.f32 %v692_v58, 0.0  ;;  %v2172_v14 = vld [vmem:[#allocation10 + $0x50] sm:$0xff]   ;;  %1949 = vmatpush3.bf16.msra.mxu1 %v2171_v13 }
 0x1d0   : > { %v728_v1 = vmax.f32 %v694_v60, 0.0  ;;  %1950 = vmatprep.subr.bf16.mxu1 %v2172_v14 }
 0x1d1   : > { %v729_v3 = vmax.f32 %v696_v62, 0.0 }
 0x1d2   : > { %v744_v4 = vpack.c.bf16 %v728_v1, %v726_v63 }
 0x1d3   : > { %v745_v5 = vpack.c.bf16 %v729_v3, %v727_v2  ;;  %1951 = vmatpush3.bf16.msra.mxu1 %v2173_v16 }
 0x1d4   : > { %1952 = vmatprep.subr.bf16.mxu1 %v2174_v17 }
 0x1d5   : > { %969 = vmatprep.mubr.bf16.mxu1 %v745_v5 }
 0x1d6   : > { %970 = vmatmul.mubr.bf16.gmra.mrb[28].mxu1 %v744_v4 }
 0x1d7   : > { %1953 = vmatpush3.bf16.msra.mxu1 %v2175_v18 }
 0x1d8   : > { %1954 = vmatprep.subr.bf16.mxu1 %v2176_v19 }
 0x1db   : > { %1955 = vmatpush3.bf16.msra.mxu1 %v2177_v20 }
 0x1dc   : > { %1956 = vmatprep.subr.bf16.mxu1 %v2178_v21 }
 0x1df   : > { %1957 = vmatpush3.bf16.msra.mxu1 %v2179_v22 }
 0x1e0   : > { %1958 = vmatprep.subr.bf16.mxu1 %v2180_v23 }
 0x1e3   : > { %1959 = vmatpush3.bf16.msra.mxu1 %v2181_v24 }
 0x271   : > { %v1898_v25 = vpop.f32.mrb[0].mxu1 }
 0x272   : > { %v1899_v27 = vpop.f32.mrb[1].mxu1 }
 0x273   : > { %v1900_v28 = vadd.f32 %v1899_v27, %v1898_v25  ;;  %v1901_v29 = vpop.f32.mrb[2].mxu1 }
 0x274   : > { %v1902_v30 = vpop.f32.mrb[3].mxu1 }
 0x275   : > { %v916_v31 = vadd.f32 %v1900_v28, %v2850_v26  ;;  %v1903_v32 = vadd.f32 %v1902_v30, %v1901_v29 }
 0x277   : > { %1583 = vst [vmem:[%s2855_s30] sm:$0xff] %v916_v31  ;;  %v919_v33 = vadd.f32 %v1903_v32, %v2850_v26 }
 0x279   : > { %v978_v34 = vpack.c.bf16 %v919_v33, %v916_v31  ;;  %1584 = vst [vmem:[%s2855_s30 + $0x8] sm:$0xff] %v919_v33  ;;  %v1904_v35 = vpop.f32.mrb[4].mxu1 }
 0x27a   : > { %v1905_v36 = vpop.f32.mrb[5].mxu1 }
 0x27b   : > { %v1906_v37 = vadd.f32 %v1905_v36, %v1904_v35  ;;  %v1907_v38 = vpop.f32.mrb[6].mxu1  ;;  %1127 = vmatmul.mubr.bf16.vlgmr.msra.gmra.mrb[32].mxu0 %v978_v34 }
 0x27c   : > { %v1908_v39 = vpop.f32.mrb[7].mxu1  ;;  %1136 = vmatprep.mubr.bf16.mxu0 %v2475_v0 }
 0x27d   : > { %v924_v40 = vadd.f32 %v1906_v37, %v2850_v26  ;;  %v1909_v41 = vadd.f32 %v1908_v39, %v1907_v38  ;;  %v2182_v39 = vld [vmem:[#allocation10 + $0x78] sm:$0xff]  }
 0x27e   : > { %1960 = vmatprep.subr.bf16.mxu1 %v2182_v39 }
 0x27f   : > { %1585 = vst [vmem:[%s2855_s30 + $0x10] sm:$0xff] %v924_v40  ;;  %v927_v42 = vadd.f32 %v1909_v41, %v2850_v26  ;;  %v1002_v41 = vld [vmem:[%s3037_s6] sm:$0x3] }
 0x281   : > { %1586 = vst [vmem:[%s2855_s30 + $0x18] sm:$0xff] %v927_v42  ;;  %v1910_v43 = vpop.f32.mrb[8].mxu1  ;;  %v979_v44 = vpack.c.bf16 %v927_v42, %v924_v40  ;;  %v2183_v40 = vld [vmem:[#allocation10 + $0x38] sm:$0xff]   ;;  %v2905_v42 = vrot.slane %v1002_v41, %v501_v12 }
 0x282   : > { %v1911_v45 = vpop.f32.mrb[9].mxu1  ;;  %1961 = vmatpush3.bf16.msra.mxu1 %v2183_v40 }
 0x283   : > { %v1912_v46 = vadd.f32 %v1911_v45, %v1910_v43  ;;  %v1913_v47 = vpop.f32.mrb[10].mxu1  ;;  %1137 = vmatmul.mubr.bf16.gmra.mrb[36].mxu0 %v979_v44 }
 0x284   : > { %v1914_v48 = vpop.f32.mrb[11].mxu1  ;;  %1146 = vmatprep.mubr.bf16.mxu0 %v2475_v0 }
 0x285   : > { %v932_v49 = vadd.f32 %v1912_v46, %v2850_v26  ;;  %v1915_v50 = vadd.f32 %v1914_v48, %v1913_v47 }
 0x287   : > { %1587 = vst [vmem:[%s2855_s30 + $0x20] sm:$0xff] %v932_v49  ;;  %v935_v51 = vadd.f32 %v1915_v50, %v2850_v26 }
 0x289   : > { %1588 = vst [vmem:[%s2855_s30 + $0x28] sm:$0xff] %v935_v51  ;;  %v1916_v52 = vpop.f32.mrb[12].mxu1  ;;  %v980_v53 = vpack.c.bf16 %v935_v51, %v932_v49 }
 0x28a   : > { %v1917_v54 = vpop.f32.mrb[13].mxu1 }
 0x28b   : > { %v1918_v55 = vadd.f32 %v1917_v54, %v1916_v52  ;;  %v1919_v56 = vpop.f32.mrb[14].mxu1  ;;  %1147 = vmatmul.mubr.bf16.gmra.mrb[40].mxu0 %v980_v53 }
 0x28c   : > { %v1920_v57 = vpop.f32.mrb[15].mxu1  ;;  %1156 = vmatprep.mubr.bf16.mxu0 %v2475_v0 }
 0x28d   : > { %v940_v58 = vadd.f32 %v1918_v55, %v2850_v26  ;;  %v1921_v59 = vadd.f32 %v1920_v57, %v1919_v56 }
 0x28f   : > { %1589 = vst [vmem:[%s2855_s30 + $0x30] sm:$0xff] %v940_v58  ;;  %v943_v60 = vadd.f32 %v1921_v59, %v2850_v26 }
 0x291   : > { %1590 = vst [vmem:[%s2855_s30 + $0x38] sm:$0xff] %v943_v60  ;;  %v1922_v61 = vpop.f32.mrb[16].mxu1  ;;  %v981_v62 = vpack.c.bf16 %v943_v60, %v940_v58 }
 0x292   : > { %v1923_v63 = vpop.f32.mrb[17].mxu1 }
 0x293   : > { %v1924_v1 = vadd.f32 %v1923_v63, %v1922_v61  ;;  %v1925_v2 = vpop.f32.mrb[18].mxu1  ;;  %1157 = vmatmul.mubr.bf16.gmra.mrb[44].mxu0 %v981_v62 }
 0x294   : > { %v1926_v3 = vpop.f32.mrb[19].mxu1  ;;  %1166 = vmatprep.mubr.bf16.mxu0 %v2475_v0 }
 0x295   : > { %v948_v4 = vadd.f32 %v1924_v1, %v2850_v26  ;;  %v1927_v5 = vadd.f32 %v1926_v3, %v1925_v2 }
 0x297   : > { %1591 = vst [vmem:[%s2855_s30 + $0x40] sm:$0xff] %v948_v4  ;;  %v951_v6 = vadd.f32 %v1927_v5, %v2850_v26 }
 0x299   : > { %1592 = vst [vmem:[%s2855_s30 + $0x48] sm:$0xff] %v951_v6  ;;  %v1928_v7 = vpop.f32.mrb[20].mxu1  ;;  %v982_v8 = vpack.c.bf16 %v951_v6, %v948_v4 }
 0x29a   : > { %v1929_v11 = vpop.f32.mrb[21].mxu1 }
 0x29b   : > { %v1930_v15 = vadd.f32 %v1929_v11, %v1928_v7  ;;  %v1931_v13 = vpop.f32.mrb[22].mxu1  ;;  %1167 = vmatmul.mubr.bf16.gmra.mrb[48].mxu0 %v982_v8 }
 0x29c   : > { %v1932_v14 = vpop.f32.mrb[23].mxu1  ;;  %1176 = vmatprep.mubr.bf16.mxu0 %v2475_v0 }
 0x29d   : > { %v956_v16 = vadd.f32 %v1930_v15, %v2850_v26  ;;  %v1933_v17 = vadd.f32 %v1932_v14, %v1931_v13 }
 0x29f   : > { %1593 = vst [vmem:[%s2855_s30 + $0x50] sm:$0xff] %v956_v16  ;;  %v959_v18 = vadd.f32 %v1933_v17, %v2850_v26 }
 0x2a1   : > { %1594 = vst [vmem:[%s2855_s30 + $0x58] sm:$0xff] %v959_v18  ;;  %v1934_v19 = vpop.f32.mrb[24].mxu1  ;;  %v983_v20 = vpack.c.bf16 %v959_v18, %v956_v16 }
 0x2a2   : > { %v1935_v21 = vpop.f32.mrb[25].mxu1 }
 0x2a3   : > { %v1936_v22 = vadd.f32 %v1935_v21, %v1934_v19  ;;  %v1937_v23 = vpop.f32.mrb[26].mxu1  ;;  %1177 = vmatmul.mubr.bf16.gmra.mrb[52].mxu0 %v983_v20 }
 0x2a4   : > { %v1938_v24 = vpop.f32.mrb[27].mxu1  ;;  %1186 = vmatprep.mubr.bf16.mxu0 %v2475_v0 }
 0x2a5   : > { %v964_v25 = vadd.f32 %v1936_v22, %v2850_v26  ;;  %v1939_v27 = vadd.f32 %v1938_v24, %v1937_v23 }
 0x2a7   : > { %1595 = vst [vmem:[%s2855_s30 + $0x60] sm:$0xff] %v964_v25  ;;  %v967_v28 = vadd.f32 %v1939_v27, %v2850_v26 }
 0x2a9   : > { %1596 = vst [vmem:[%s2855_s30 + $0x68] sm:$0xff] %v967_v28  ;;  %v1940_v29 = vpop.f32.mrb[28].mxu1  ;;  %v984_v30 = vpack.c.bf16 %v967_v28, %v964_v25 }
 0x2aa   : > { %v1941_v31 = vpop.f32.mrb[29].mxu1 }
 0x2ab   : > { %v1942_v32 = vadd.f32 %v1941_v31, %v1940_v29  ;;  %v1943_v33 = vpop.f32.mrb[30].mxu1  ;;  %1187 = vmatmul.mubr.bf16.gmra.mrb[56].mxu0 %v984_v30 }
 0x2ac   : > { %v1944_v34 = vpop.f32.mrb[31].mxu1  ;;  %1196 = vmatprep.mubr.bf16.mxu0 %v2475_v0  ;;  %v2901_v0 = vrot.slane %v1002_v41, %v497_v10 }
 0x2ad   : > { %v972_v35 = vadd.f32 %v1942_v32, %v2850_v26  ;;  %v1945_v36 = vadd.f32 %v1944_v34, %v1943_v33 }
 0x2af   : > { %1597 = vst [vmem:[%s2855_s30 + $0x70] sm:$0xff] %v972_v35  ;;  %v975_v37 = vadd.f32 %v1945_v36, %v2850_v26 }
 0x2b1   : > { %1598 = vst [vmem:[%s2855_s30 + $0x78] sm:$0xff] %v975_v37  ;;  %v985_v38 = vpack.c.bf16 %v975_v37, %v972_v35  ;;  %s2390_s30 = scalar_lea.vmem %s2985_s27, 2048 }
 0x2b2   : > { %p2391_p5 = scmp.ne.s32.totalorder %s2985_s27, %s2390_s30  ;;  %p2398_p2 = scmp.lt.s32.totalorder %s2396_s24, %s2390_s30 }
 0x2b3   : > { %1197 = vmatmul.mubr.bf16.gmra.mrb[60].mxu0 %v985_v38 }
 0x2b4   : > { %p2392_p7 = pnand %p2391_p5, %p2699_p10  ;;  %p2399_p13 = por %p2398_p2, %p2397_p1 }
 0x2b6   : > { %p2393_p12 = pneg %p2392_p7 }
 0x2b8   : > { %p2400_p9 = pnand %p2399_p13, %p2393_p12 }
 0x34e   : > { %v1128_v26 = vpop.f32.mrb[32].mxu0 }
 0x34f   : > { %v1129_v43 = vadd.f32 %v1128_v26, %v2901_v0  ;;  %v1130_v44 = vpop.f32.mrb[33].mxu0 }
 0x350   : > { %v1131_v45 = vadd.f32 %v1130_v44, %v2905_v42  ;;  %v1132_v46 = vpop.f32.mrb[34].mxu0 }
 0x351   : > { %v1133_v47 = vadd.f32 %v1132_v46, %v2901_v0  ;;  %v1134_v48 = vpop.f32.mrb[35].mxu0  ;;  %v1207_v50 = vmax.f32 %v1129_v43, 0.0 }
 0x352   : > { %v1135_v49 = vadd.f32 %v1134_v48, %v2905_v42  ;;  %v1208_v10 = vmax.f32 %v1131_v45, 0.0 }
 0x353   : > { %v1209_v51 = vmax.f32 %v1133_v47, 0.0 }
 0x354   : > { %v1210_v52 = vmax.f32 %v1135_v49, 0.0 }
 0x355   : > { %v1239_v53 = vpack.c.bf16 %v1209_v51, %v1207_v50 }
 0x356   : > { %v1240_v9 = vpack.c.bf16 %v1210_v52, %v1208_v10  ;;  %v1138_v12 = vpop.f32.mrb[36].mxu0 }
 0x357   : > { %v1139_v54 = vadd.f32 %v1138_v12, %v2901_v0  ;;  %v1140_v55 = vpop.f32.mrb[37].mxu0 }
 0x358   : > { %v1141_v56 = vadd.f32 %v1140_v55, %v2905_v42  ;;  %v1142_v57 = vpop.f32.mrb[38].mxu0  ;;  %1422 = vmatprep.mubr.bf16.mxu1 %v1240_v9 }
 0x359   : > { %v1143_v58 = vadd.f32 %v1142_v57, %v2901_v0  ;;  %v1144_v59 = vpop.f32.mrb[39].mxu0  ;;  %1423 = vmatmul.mubr.bf16.vlgmr.msra.gmra.mrb[32].mxu1 %v1239_v53  ;;  %v1211_v61 = vmax.f32 %v1139_v54, 0.0 }
 0x35a   : > { %v1145_v60 = vadd.f32 %v1144_v59, %v2905_v42  ;;  %v1212_v63 = vmax.f32 %v1141_v56, 0.0 }
 0x35b   : > { %v1213_v62 = vmax.f32 %v1143_v58, 0.0 }
 0x35c   : > { %v1214_v1 = vmax.f32 %v1145_v60, 0.0 }
 0x35d   : > { %v1241_v2 = vpack.c.bf16 %v1213_v62, %v1211_v61 }
 0x35e   : > { %v1242_v3 = vpack.c.bf16 %v1214_v1, %v1212_v63  ;;  %v1148_v4 = vpop.f32.mrb[40].mxu0 }
 0x35f   : > { %v1149_v5 = vadd.f32 %v1148_v4, %v2901_v0  ;;  %v1150_v6 = vpop.f32.mrb[41].mxu0 }
 0x360   : > { %v1151_v7 = vadd.f32 %v1150_v6, %v2905_v42  ;;  %v1152_v8 = vpop.f32.mrb[42].mxu0  ;;  %1430 = vmatprep.mubr.bf16.mxu1 %v1242_v3 }
 0x361   : > { %v1153_v11 = vadd.f32 %v1152_v8, %v2901_v0  ;;  %v1154_v15 = vpop.f32.mrb[43].mxu0  ;;  %1431 = vmatmul.mubr.bf16.gmra.mrb[36].mxu1 %v1241_v2  ;;  %v1215_v14 = vmax.f32 %v1149_v5, 0.0 }
 0x362   : > { %v1155_v13 = vadd.f32 %v1154_v15, %v2905_v42  ;;  %v1216_v17 = vmax.f32 %v1151_v7, 0.0 }
 0x363   : > { %v1217_v16 = vmax.f32 %v1153_v11, 0.0 }
 0x364   : > { %v1218_v18 = vmax.f32 %v1155_v13, 0.0 }
 0x365   : > { %v1243_v19 = vpack.c.bf16 %v1217_v16, %v1215_v14 }
 0x366   : > { %v1244_v20 = vpack.c.bf16 %v1218_v18, %v1216_v17  ;;  %v1158_v21 = vpop.f32.mrb[44].mxu0 }
 0x367   : > { %v1159_v22 = vadd.f32 %v1158_v21, %v2901_v0  ;;  %v1160_v23 = vpop.f32.mrb[45].mxu0 }
 0x368   : > { %v1161_v24 = vadd.f32 %v1160_v23, %v2905_v42  ;;  %v1162_v25 = vpop.f32.mrb[46].mxu0  ;;  %1438 = vmatprep.mubr.bf16.mxu1 %v1244_v20 }
 0x369   : > { %v1163_v27 = vadd.f32 %v1162_v25, %v2901_v0  ;;  %v1164_v28 = vpop.f32.mrb[47].mxu0  ;;  %1439 = vmatmul.mubr.bf16.gmra.mrb[40].mxu1 %v1243_v19  ;;  %v1219_v30 = vmax.f32 %v1159_v22, 0.0 }
 0x36a   : > { %v1165_v29 = vadd.f32 %v1164_v28, %v2905_v42  ;;  %v1220_v32 = vmax.f32 %v1161_v24, 0.0 }
 0x36b   : > { %v1221_v31 = vmax.f32 %v1163_v27, 0.0 }
 0x36c   : > { %v1222_v33 = vmax.f32 %v1165_v29, 0.0 }
 0x36d   : > { %v1245_v34 = vpack.c.bf16 %v1221_v31, %v1219_v30  ;;  %v2942_v31 = vld [vmem:[%s3070_s19] ss:$0 sm:$0xff] }
 0x36e   : > { %v1246_v35 = vpack.c.bf16 %v1222_v33, %v1220_v32  ;;  %v1168_v36 = vpop.f32.mrb[48].mxu0 }
 0x36f   : > { %v1169_v37 = vadd.f32 %v1168_v36, %v2901_v0  ;;  %v1170_v38 = vpop.f32.mrb[49].mxu0 }
 0x370   : > { %v1171_v39 = vadd.f32 %v1170_v38, %v2905_v42  ;;  %v1172_v40 = vpop.f32.mrb[50].mxu0  ;;  %1446 = vmatprep.mubr.bf16.mxu1 %v1246_v35 }
 0x371   : > { %v1173_v41 = vadd.f32 %v1172_v40, %v2901_v0  ;;  %v1174_v26 = vpop.f32.mrb[51].mxu0  ;;  %1447 = vmatmul.mubr.bf16.gmra.mrb[44].mxu1 %v1245_v34  ;;  %v1223_v44 = vmax.f32 %v1169_v37, 0.0 }
 0x372   : > { %v1175_v43 = vadd.f32 %v1174_v26, %v2905_v42  ;;  %v1224_v46 = vmax.f32 %v1171_v39, 0.0 }
 0x373   : > { %v1225_v45 = vmax.f32 %v1173_v41, 0.0 }
 0x374   : > { %v1226_v47 = vmax.f32 %v1175_v43, 0.0 }
 0x375   : > { %v1247_v48 = vpack.c.bf16 %v1225_v45, %v1223_v44 }
 0x376   : > { %v1248_v49 = vpack.c.bf16 %v1226_v47, %v1224_v46  ;;  %v1178_v50 = vpop.f32.mrb[52].mxu0 }
 0x377   : > { %v1179_v51 = vadd.f32 %v1178_v50, %v2901_v0  ;;  %v1180_v10 = vpop.f32.mrb[53].mxu0 }
 0x378   : > { %v1181_v52 = vadd.f32 %v1180_v10, %v2905_v42  ;;  %v1182_v53 = vpop.f32.mrb[54].mxu0  ;;  %1454 = vmatprep.mubr.bf16.mxu1 %v1248_v49 }
 0x379   : > { %v1183_v9 = vadd.f32 %v1182_v53, %v2901_v0  ;;  %v1184_v12 = vpop.f32.mrb[55].mxu0  ;;  %1455 = vmatmul.mubr.bf16.gmra.mrb[48].mxu1 %v1247_v48  ;;  %v1227_v55 = vmax.f32 %v1179_v51, 0.0 }
 0x37a   : > { %v1185_v54 = vadd.f32 %v1184_v12, %v2905_v42  ;;  %v1228_v57 = vmax.f32 %v1181_v52, 0.0 }
 0x37b   : > { %v1229_v56 = vmax.f32 %v1183_v9, 0.0 }
 0x37c   : > { %v1230_v58 = vmax.f32 %v1185_v54, 0.0 }
 0x37d   : > { %v1249_v59 = vpack.c.bf16 %v1229_v56, %v1227_v55 }
 0x37e   : > { %v1250_v60 = vpack.c.bf16 %v1230_v58, %v1228_v57  ;;  %v1188_v61 = vpop.f32.mrb[56].mxu0 }
 0x37f   : > { %v1189_v62 = vadd.f32 %v1188_v61, %v2901_v0  ;;  %v1190_v63 = vpop.f32.mrb[57].mxu0 }
 0x380   : > { %v1191_v1 = vadd.f32 %v1190_v63, %v2905_v42  ;;  %v1192_v2 = vpop.f32.mrb[58].mxu0  ;;  %1462 = vmatprep.mubr.bf16.mxu1 %v1250_v60 }
 0x381   : > { %v1193_v3 = vadd.f32 %v1192_v2, %v2901_v0  ;;  %v1194_v4 = vpop.f32.mrb[59].mxu0  ;;  %1463 = vmatmul.mubr.bf16.gmra.mrb[52].mxu1 %v1249_v59  ;;  %v1231_v6 = vmax.f32 %v1189_v62, 0.0 }
 0x382   : > { %v1195_v5 = vadd.f32 %v1194_v4, %v2905_v42  ;;  %v1232_v8 = vmax.f32 %v1191_v1, 0.0 }
 0x383   : > { %v1233_v7 = vmax.f32 %v1193_v3, 0.0 }
 0x384   : > { %v1234_v11 = vmax.f32 %v1195_v5, 0.0 }
 0x385   : > { %v1251_v15 = vpack.c.bf16 %v1233_v7, %v1231_v6 }
 0x386   : > { %v1252_v13 = vpack.c.bf16 %v1234_v11, %v1232_v8  ;;  %v1198_v14 = vpop.f32.mrb[60].mxu0 }
 0x387   : > { %v1199_v16 = vadd.f32 %v1198_v14, %v2901_v0  ;;  %v1200_v17 = vpop.f32.mrb[61].mxu0 }
 0x388   : > { %v1201_v18 = vadd.f32 %v1200_v17, %v2905_v42  ;;  %v1202_v19 = vpop.f32.mrb[62].mxu0  ;;  %1470 = vmatprep.mubr.bf16.mxu1 %v1252_v13 }
 0x389   : > { %v1203_v20 = vadd.f32 %v1202_v19, %v2901_v0  ;;  %v1204_v21 = vpop.f32.mrb[63].mxu0  ;;  %1471 = vmatmul.mubr.bf16.gmra.mrb[56].mxu1 %v1251_v15  ;;  %v1235_v23 = vmax.f32 %v1199_v16, 0.0 }
 0x38a   : > { %v1205_v22 = vadd.f32 %v1204_v21, %v2905_v42  ;;  %v1236_v25 = vmax.f32 %v1201_v18, 0.0 }
 0x38b   : > { %v1237_v24 = vmax.f32 %v1203_v20, 0.0 }
 0x38c   : > { %v1238_v27 = vmax.f32 %v1205_v22, 0.0 }
 0x38d   : > { %v1253_v28 = vpack.c.bf16 %v1237_v24, %v1235_v23 }
 0x38e   : > { %v1254_v29 = vpack.c.bf16 %v1238_v27, %v1236_v25 }
 0x390   : > { %1478 = vmatprep.mubr.bf16.mxu1 %v1254_v29 }
 0x391   : > { %1479 = vmatmul.mubr.bf16.gmra.mrb[60].mxu1 %v1253_v28 }
 0x42c   : > { %v1962_v30 = vpop.f32.mrb[32].mxu1 }
 0x42d   : > { %v1963_v32 = vpop.f32.mrb[33].mxu1 }
 0x42e   : > { %v1964_v0 = vadd.f32 %v1963_v32, %v1962_v30  ;;  %v1965_v33 = vpop.f32.mrb[34].mxu1 }
 0x42f   : > { %v1966_v34 = vpop.f32.mrb[35].mxu1 }
 0x430   : > { %v1425_v42 = vadd.f32 %v1964_v0, %v2942_v31  ;;  %v1967_v35 = vadd.f32 %v1966_v34, %v1965_v33 }
 0x432   : > { %v1859_v36 = vmul.f32 -1.442695, %v1425_v42  ;;  %v1428_v37 = vadd.f32 %v1967_v35, %v2942_v31 }
 0x434   : > { %2184 = vpow2.f32 %v1859_v36  ;;  %v1860_v38 = vmul.f32 -1.442695, %v1428_v37  ;;  %v1968_v39 = vpop.f32.mrb[36].mxu1 }
 0x435   : > { %v1969_v40 = vpop.f32.mrb[37].mxu1 }
 0x436   : > { %2186 = vpow2.f32 %v1860_v38  ;;  %v1970_v41 = vadd.f32 %v1969_v40, %v1968_v39  ;;  %v1971_v26 = vpop.f32.mrb[38].mxu1 }
 0x437   : > { %v1972_v43 = vpop.f32.mrb[39].mxu1 }
 0x438   : > { %v1433_v44 = vadd.f32 %v1970_v41, %v2942_v31  ;;  %v1973_v45 = vadd.f32 %v1972_v43, %v1971_v26 }
 0x43a   : > { %v1861_v46 = vmul.f32 -1.442695, %v1433_v44  ;;  %v1436_v47 = vadd.f32 %v1973_v45, %v2942_v31 }
 0x43c   : > { %2188 = vpow2.f32 %v1861_v46  ;;  %v1862_v48 = vmul.f32 -1.442695, %v1436_v47  ;;  %v1974_v49 = vpop.f32.mrb[40].mxu1 }
 0x43d   : > { %v1975_v50 = vpop.f32.mrb[41].mxu1 }
 0x43e   : > { %v2185_v51 = vpop.eup %2184  ;;  %2190 = vpow2.f32 %v1862_v48  ;;  %v1976_v10 = vadd.f32 %v1975_v50, %v1974_v49  ;;  %v1977_v52 = vpop.f32.mrb[42].mxu1 }
 0x43f   : > { %v1535_v53 = vadd.f32 1.0, %v2185_v51  ;;  %v1978_v9 = vpop.f32.mrb[43].mxu1 }
 0x440   : > { %v2187_v12 = vpop.eup %2186  ;;  %v1441_v54 = vadd.f32 %v1976_v10, %v2942_v31  ;;  %v1979_v55 = vadd.f32 %v1978_v9, %v1977_v52 }
 0x441   : > { %2192 = vrcp.f32 %v1535_v53  ;;  %v1536_v56 = vadd.f32 1.0, %v2187_v12 }
 0x442   : > { %v1863_v57 = vmul.f32 -1.442695, %v1441_v54  ;;  %v1444_v58 = vadd.f32 %v1979_v55, %v2942_v31 }
 0x443   : > { %2194 = vrcp.f32 %v1536_v56 }
 0x444   : > { %2196 = vpow2.f32 %v1863_v57  ;;  %v1864_v59 = vmul.f32 -1.442695, %v1444_v58  ;;  %v1980_v60 = vpop.f32.mrb[44].mxu1 }
 0x445   : > { %v1981_v61 = vpop.f32.mrb[45].mxu1 }
 0x446   : > { %v2189_v62 = vpop.eup %2188  ;;  %2198 = vpow2.f32 %v1864_v59  ;;  %v1982_v63 = vadd.f32 %v1981_v61, %v1980_v60  ;;  %v1983_v1 = vpop.f32.mrb[46].mxu1 }
 0x447   : > { %v1537_v2 = vadd.f32 1.0, %v2189_v62  ;;  %v1984_v3 = vpop.f32.mrb[47].mxu1 }
 0x448   : > { %v2191_v4 = vpop.eup %2190  ;;  %v1449_v5 = vadd.f32 %v1982_v63, %v2942_v31  ;;  %v1985_v6 = vadd.f32 %v1984_v3, %v1983_v1 }
 0x449   : > { %2200 = vrcp.f32 %v1537_v2  ;;  %v1538_v7 = vadd.f32 1.0, %v2191_v4 }
 0x44a   : > { %v1865_v8 = vmul.f32 -1.442695, %v1449_v5  ;;  %v1452_v11 = vadd.f32 %v1985_v6, %v2942_v31 }
 0x44b   : > { %v2193_v15 = vpop.eup %2192  ;;  %2202 = vrcp.f32 %v1538_v7 }
 0x44c   : > { %1599 = vst [vmem:[%s2954_s21] sm:$0xff] %v2193_v15  ;;  %2204 = vpow2.f32 %v1865_v8  ;;  %v1866_v13 = vmul.f32 -1.442695, %v1452_v11  ;;  %v1986_v14 = vpop.f32.mrb[48].mxu1 }
 0x44d   : > { %v2195_v16 = vpop.eup %2194  ;;  %v1987_v17 = vpop.f32.mrb[49].mxu1 }
 0x44e   : > { %v2197_v18 = vpop.eup %2196  ;;  %1600 = vst [vmem:[%s2954_s21 + $0x8] sm:$0xff] %v2195_v16  ;;  %2206 = vpow2.f32 %v1866_v13  ;;  %v1988_v19 = vadd.f32 %v1987_v17, %v1986_v14  ;;  %v1989_v20 = vpop.f32.mrb[50].mxu1 }
 0x44f   : > { %v1539_v21 = vadd.f32 1.0, %v2197_v18  ;;  %v1990_v22 = vpop.f32.mrb[51].mxu1 }
 0x450   : > { %v2199_v23 = vpop.eup %2198  ;;  %v1457_v24 = vadd.f32 %v1988_v19, %v2942_v31  ;;  %v1991_v25 = vadd.f32 %v1990_v22, %v1989_v20 }
 0x451   : > { %2208 = vrcp.f32 %v1539_v21  ;;  %v1540_v27 = vadd.f32 1.0, %v2199_v23 }
 0x452   : > { %v1867_v28 = vmul.f32 -1.442695, %v1457_v24  ;;  %v1460_v29 = vadd.f32 %v1991_v25, %v2942_v31 }
 0x453   : > { %v2201_v30 = vpop.eup %2200  ;;  %2210 = vrcp.f32 %v1540_v27 }
 0x454   : > { %1601 = vst [vmem:[%s2954_s21 + $0x10] sm:$0xff] %v2201_v30  ;;  %2212 = vpow2.f32 %v1867_v28  ;;  %v1868_v32 = vmul.f32 -1.442695, %v1460_v29  ;;  %v1992_v0 = vpop.f32.mrb[52].mxu1 }
 0x455   : > { %v2203_v33 = vpop.eup %2202  ;;  %v1993_v34 = vpop.f32.mrb[53].mxu1 }
 0x456   : > { %v2205_v42 = vpop.eup %2204  ;;  %1602 = vst [vmem:[%s2954_s21 + $0x18] sm:$0xff] %v2203_v33  ;;  %2214 = vpow2.f32 %v1868_v32  ;;  %v1994_v35 = vadd.f32 %v1993_v34, %v1992_v0  ;;  %v1995_v36 = vpop.f32.mrb[54].mxu1 }
 0x457   : > { %v1541_v37 = vadd.f32 1.0, %v2205_v42  ;;  %v1996_v38 = vpop.f32.mrb[55].mxu1 }
 0x458   : > { %v2207_v39 = vpop.eup %2206  ;;  %v1465_v40 = vadd.f32 %v1994_v35, %v2942_v31  ;;  %v1997_v41 = vadd.f32 %v1996_v38, %v1995_v36 }
 0x459   : > { %2216 = vrcp.f32 %v1541_v37  ;;  %v1542_v26 = vadd.f32 1.0, %v2207_v39 }
 0x45a   : > { %v1869_v43 = vmul.f32 -1.442695, %v1465_v40  ;;  %v1468_v44 = vadd.f32 %v1997_v41, %v2942_v31 }
 0x45b   : > { %v2209_v45 = vpop.eup %2208  ;;  %2218 = vrcp.f32 %v1542_v26 }
 0x45c   : > { %1603 = vst [vmem:[%s2954_s21 + $0x20] sm:$0xff] %v2209_v45  ;;  %2220 = vpow2.f32 %v1869_v43  ;;  %v1870_v46 = vmul.f32 -1.442695, %v1468_v44  ;;  %v1998_v47 = vpop.f32.mrb[56].mxu1 }
 0x45d   : > { %v2211_v48 = vpop.eup %2210  ;;  %v1999_v49 = vpop.f32.mrb[57].mxu1 }
 0x45e   : > { %v2213_v50 = vpop.eup %2212  ;;  %1604 = vst [vmem:[%s2954_s21 + $0x28] sm:$0xff] %v2211_v48  ;;  %2222 = vpow2.f32 %v1870_v46  ;;  %v2000_v51 = vadd.f32 %v1999_v49, %v1998_v47  ;;  %v2001_v10 = vpop.f32.mrb[58].mxu1 }
 0x45f   : > { %v1543_v52 = vadd.f32 1.0, %v2213_v50  ;;  %v2002_v53 = vpop.f32.mrb[59].mxu1 }
 0x460   : > { %v2215_v9 = vpop.eup %2214  ;;  %v1473_v12 = vadd.f32 %v2000_v51, %v2942_v31  ;;  %v2003_v54 = vadd.f32 %v2002_v53, %v2001_v10 }
 0x461   : > { %2224 = vrcp.f32 %v1543_v52  ;;  %v1544_v55 = vadd.f32 1.0, %v2215_v9 }
 0x462   : > { %v1871_v56 = vmul.f32 -1.442695, %v1473_v12  ;;  %v1476_v57 = vadd.f32 %v2003_v54, %v2942_v31 }
 0x463   : > { %v2217_v58 = vpop.eup %2216  ;;  %2226 = vrcp.f32 %v1544_v55 }
 0x464   : > { %1605 = vst [vmem:[%s2954_s21 + $0x30] sm:$0xff] %v2217_v58  ;;  %2228 = vpow2.f32 %v1871_v56  ;;  %v1872_v59 = vmul.f32 -1.442695, %v1476_v57  ;;  %v2004_v60 = vpop.f32.mrb[60].mxu1 }
 0x465   : > { %v2219_v61 = vpop.eup %2218  ;;  %v2005_v62 = vpop.f32.mrb[61].mxu1 }
 0x466   : > { %v2221_v63 = vpop.eup %2220  ;;  %1606 = vst [vmem:[%s2954_s21 + $0x38] sm:$0xff] %v2219_v61  ;;  %2230 = vpow2.f32 %v1872_v59  ;;  %v2006_v1 = vadd.f32 %v2005_v62, %v2004_v60  ;;  %v2007_v2 = vpop.f32.mrb[62].mxu1 }
 0x467   : > { %v1545_v3 = vadd.f32 1.0, %v2221_v63  ;;  %v2008_v4 = vpop.f32.mrb[63].mxu1 }
 0x468   : > { %v2223_v5 = vpop.eup %2222  ;;  %v1481_v6 = vadd.f32 %v2006_v1, %v2942_v31  ;;  %v2009_v7 = vadd.f32 %v2008_v4, %v2007_v2 }
 0x469   : > { %2232 = vrcp.f32 %v1545_v3  ;;  %v1546_v8 = vadd.f32 1.0, %v2223_v5 }
 0x46a   : > { %v1873_v11 = vmul.f32 -1.442695, %v1481_v6  ;;  %v1484_v15 = vadd.f32 %v2009_v7, %v2942_v31 }
 0x46b   : > { %v2225_v13 = vpop.eup %2224  ;;  %2234 = vrcp.f32 %v1546_v8 }
 0x46c   : > { %1607 = vst [vmem:[%s2954_s21 + $0x40] sm:$0xff] %v2225_v13  ;;  %2236 = vpow2.f32 %v1873_v11  ;;  %v1874_v14 = vmul.f32 -1.442695, %v1484_v15 }
 0x46d   : > { %v2227_v16 = vpop.eup %2226 }
 0x46e   : > { %v2229_v17 = vpop.eup %2228  ;;  %1608 = vst [vmem:[%s2954_s21 + $0x48] sm:$0xff] %v2227_v16  ;;  %2238 = vpow2.f32 %v1874_v14 }
 0x46f   : > { %v1547_v18 = vadd.f32 1.0, %v2229_v17 }
 0x470   : > { %v2231_v19 = vpop.eup %2230 }
 0x471   : > { %2240 = vrcp.f32 %v1547_v18  ;;  %v1548_v20 = vadd.f32 1.0, %v2231_v19 }
 0x473   : > { %v2233_v21 = vpop.eup %2232  ;;  %2242 = vrcp.f32 %v1548_v20 }
 0x474   : > { %1609 = vst [vmem:[%s2954_s21 + $0x50] sm:$0xff] %v2233_v21 }
 0x475   : > { %v2235_v31 = vpop.eup %2234 }
 0x476   : > { %v2237_v22 = vpop.eup %2236  ;;  %1610 = vst [vmem:[%s2954_s21 + $0x58] sm:$0xff] %v2235_v31 }
 0x477   : > { %v1549_v23 = vadd.f32 1.0, %v2237_v22 }
 0x478   : > { %v2239_v24 = vpop.eup %2238 }
 0x479   : > { %2244 = vrcp.f32 %v1549_v23  ;;  %v1550_v25 = vadd.f32 1.0, %v2239_v24 }
 0x47b   : > { %v2241_v27 = vpop.eup %2240  ;;  %2246 = vrcp.f32 %v1550_v25 }
 0x47c   : > { %1611 = vst [vmem:[%s2954_s21 + $0x60] sm:$0xff] %v2241_v27 }
 0x47d   : > { %v2243_v28 = vpop.eup %2242 }
 0x47e   : > { %1612 = vst [vmem:[%s2954_s21 + $0x68] sm:$0xff] %v2243_v28 }
 0x483   : > { %v2245_v29 = vpop.eup %2244 }
 0x484   : > { %1613 = vst [vmem:[%s2954_s21 + $0x70] sm:$0xff] %v2245_v29 }
 0x485   : > { %v2247_v30 = vpop.eup %2246 }
 0x486   : > { %1614 = vst [vmem:[%s2954_s21 + $0x78] sm:$0xff] %v2247_v30 }
 0x487   : > { %2403 = shalt.err (!%p2400_p9)
}
 0x488   : > { %s2404_s8 = scalar_lea.hbm %s2983_s12, 2048  ;;  %s2408_s21 = scalar_lea.hbm %s3071_s18, 4096 }
 0x489   : > { %p2405_p0 = scmp.ne.s32.totalorder %s2983_s12, %s2404_s8  ;;  %p2409_p8 = scmp.lt.u32.totalorder %s2983_s12, %s3071_s18 }
 0x48a   : > { %p2410_p6 = scmp.lt.u32.totalorder %s2408_s21, %s2404_s8  ;;  %p2412_p5 = scmp.lt.u32.totalorder %s2404_s8, %s2983_s12 }
 0x48b   : > { %p2406_p11 = pnand %p2405_p0, %p2699_p10 }
 0x48c   : > { %p2411_p3 = por %p2410_p6, %p2409_p8 }
 0x48d   : > { %p2407_p4 = pneg %p2406_p11 }
 0x48e   : > { %p2413_p7 = por %p2412_p5, %p2411_p3 }
 0x490   : > { %p2414_p12 = pnand %p2413_p7, %p2407_p4 }
 0x492   : > { %2417 = shalt.err (!%p2414_p12)
}
 0x493   : > { %s2477_s10 = smov 128   ;;  %s2478_s30 = smov 8  }
 0x494   : > { %2028 = dma.vmem_to_hbm [thread:$0]  (%p2699_p10), %s2985_s27, 2048, %s2983_s12, %s1621_s29, %s2477_s10, %s2477_s10, %s2478_s30  }
 0x495 PF: > { %s3072_s17 = sld [smem:[#allocation16_spill]]  ;;  %s3073_s13 = sld [smem:[#allocation17_spill]] }
 0x496   : > { %p3075_p2 = scmp.ge.s32.totalorder %s2464_s16, 2 }
 0x49b   : > { %s1661_s24 = sand.u32 1, %s3072_s17   ;;  %p3074_p1 = scmp.ne.s32.totalorder %s3073_s13, 0 }
 0x49c   : > { %s1662_s8 = scalar_lea.sflag [#allocation4], %s1661_s24 }
 0x49d   : > { %p2048_p13 = pnand %p3075_p2, %p3074_p1 }
 0x49f   : > { %2447 = dma.done.wait (!%p2048_p13), %s1662_s8, 2048  }
 0x4a0   : > { %2449 = vsyncadd (!%p2048_p13), %s1662_s8, 4294965248  ;;  %p26_p9 = scmp.ge.s32.totalorder %s2689_s22, 4   ;;  %s3076_s13 = smov %s2456_s14 }
 0x4a1   : > { %s3077_s14 = smov %s2460_s15  ;;  %s3078_s15 = smov %s2705_s20 }
 0x4a2   : > { %s3079_s16 = smov %s2689_s22  ;;  %28 = sbr.rel (!%p26_p9) target bundleno = 10 (0xa), region = 129 }
 0x4a9   :  { %1667 = vsyncpa [#allocation3], 1 }
 0x4aa   :  { %1669 = vsyncpa [#allocation3 + $0x1], 1 }
 0x4ab   :  { %1670 = vsyncpa [#allocation6], 1 }
 0x4ac   :  { %1671 = vsyncpa [#allocation9], 1 }
 0x4ad   :  { %1672 = vsyncpa [#allocation4], 1 }
 0x4ae   :  { %1674 = vsyncpa [#allocation4 + $0x1], 1 }

</bundles_post_ra>
